<compile_context>
chip_gen: v5e
topology: v5e:2x2
jax: 0.10.0
libtpu: 0.0.40
codegen_flags: <defaults>
</compile_context>

<pallas_src>
import functools

import jax
import jax.numpy as jnp
from jax.experimental import pallas as pl
from jax.experimental.pallas import tpu as pltpu


def _attention_pitf_kernel(m, k, ui_ref, hist_ref, s_ref, wblk_ref, batt_ref,
                           sel_ref, wmap_ref, bmap_ref, out_ref):
    """Fused attention + mix-MLP + PITF score for one (TB,) batch tile.

    ui_ref   : (TB, 2k)   = [u | item]
    hist_ref : (TB, m*k)  = lane-packed history tag vectors
    s_ref    : (TB, 4k)   = [tagUser[t] | tagItem[t] | tagUser[neg] | tagItem[neg]]
    wblk_ref : (m*k, m*k) = block-diag(W_att) x m
    batt_ref : (1, m*k)   = b_att tiled m times
    sel_ref  : (m*k, m)   = segment-sum selector (ones on each k-block column)
    wmap_ref : (3k, k)    = W_map with the (u-h) block algebraically folded
    bmap_ref : (1, k)
    out_ref  : (1, TB)    lane-dense scores
    """
    ui = ui_ref[...]                                    # (TB, 2k)
    u = ui[:, :k]                                       # (TB, k)
    it = ui[:, k:]                                      # (TB, k)
    hist = hist_ref[...]                                # (TB, m*k)

    # --- attention MLP for all m history vectors in ONE MXU matmul ----------
    tag_h = jnp.dot(hist, wblk_ref[...], preferred_element_type=jnp.float32)
    tag_h = jnp.maximum(tag_h + batt_ref[...], 0.0)     # (TB, m*k)

    # per-segment logits <tag_h_j, u> via one lane-dense mul + one MXU matmul
    u_tiled = jnp.concatenate([u] * m, axis=-1)         # (TB, m*k)
    logits = jnp.dot(tag_h * u_tiled, sel_ref[...],
                     preferred_element_type=jnp.float32)  # (TB, m)

    # --- softmax over the m history slots -----------------------------------
    mx = jnp.max(logits, axis=-1, keepdims=True)
    e = jnp.exp(logits - mx)
    inv = pl.reciprocal(jnp.sum(e, axis=-1, keepdims=True), approx=True)
    alpha = e * inv                                     # (TB, m)

    # weighted sum of the history vectors
    h = alpha[:, 0:1] * hist[:, :k]
    for j in range(1, m):
        h = h + alpha[:, j:j + 1] * hist[:, j * k:(j + 1) * k]   # (TB, k)

    # --- mixed user vector (u-h block folded into wmap in the wrapper) ------
    cat = jnp.concatenate([u, h, u * h], axis=-1)       # (TB, 3k)
    mix = jnp.dot(cat, wmap_ref[...], preferred_element_type=jnp.float32)
    mix = jnp.maximum(mix + bmap_ref[...], 0.0)         # (TB, k)

    # --- PITF positive-minus-negative score: one lane-dense mul + reduce ----
    p = jnp.concatenate([mix, it, -mix, -it], axis=-1)  # (TB, 4k)
    r = jnp.sum(p * s_ref[...], axis=-1)                # (TB,)
    out_ref[...] = r[None, :]                           # lane-dense (1, TB)


def attention_pitf_forward(x, params, m, *, batch_tile=1024):
    """Pallas-backed AttentionPITF.forward (eval mode). Returns (B, 1, 1)."""
    (user_vecs, item_vecs, tag_user_vecs, tag_item_vecs,
     w_att, b_att, w_map, b_map) = params
    x = x.astype(jnp.int32)
    B = x.shape[0]
    k = user_vecs.shape[1]
    f32 = jnp.float32

    # ---- wrapper-side row gathers (embedding tables stay in HBM) -----------
    u = jnp.take(user_vecs, x[:, 0], axis=0).astype(f32)
    it = jnp.take(item_vecs, x[:, 1], axis=0).astype(f32)
    ui = jnp.concatenate([u, it], axis=-1)                       # (B, 2k)

    tag_both = jnp.concatenate([tag_user_vecs, tag_item_vecs], axis=-1)
    pos = jnp.take(tag_both, x[:, 2], axis=0)                    # (B, 2k)
    neg = jnp.take(tag_both, x[:, 3], axis=0)                    # (B, 2k)
    s = jnp.concatenate([pos, neg], axis=-1).astype(f32)         # (B, 4k)

    hist = jnp.take(tag_user_vecs, x[:, -m:], axis=0)            # (B, m, k)
    hist = hist.reshape(B, m * k).astype(f32)                    # lane-packed

    # ---- constant operands (tiny; block index is constant -> no re-DMA) ----
    wblk = jnp.kron(jnp.eye(m, dtype=f32), w_att.astype(f32))    # (m*k, m*k)
    batt = jnp.tile(b_att.astype(f32), (m,)).reshape(1, m * k)   # (1, m*k)
    sel = jnp.kron(jnp.eye(m, dtype=f32), jnp.ones((k, 1), f32)) # (m*k, m)
    w1, w2, w3, w4 = (w_map[:k], w_map[k:2 * k],
                      w_map[2 * k:3 * k], w_map[3 * k:])
    wmap_f = jnp.concatenate([w1 + w3, w2 - w3, w4], axis=0).astype(f32)
    bmap = b_map.astype(f32).reshape(1, k)

    # ---- batch tiling (big tile; >=2 grid steps on large batches for v7x) --
    def _rup(a, b):
        return -(-a // b) * b

    b128 = _rup(B, 128)
    TB = min(_rup(batch_tile, 128), b128)
    if TB >= b128 and B >= 256:
        TB = _rup(-(-b128 // 2), 128)    # split so both v7x TensorCores work
    n_tiles = pl.cdiv(B, TB)
    B_pad = n_tiles * TB
    pad = B_pad - B
    if pad:
        padr = lambda a: jnp.pad(a, ((0, pad), (0, 0)))
        ui, hist, s = padr(ui), padr(hist), padr(s)

    vec = lambda d: pl.BlockSpec((TB, d), lambda i: (i, 0))
    full = lambda shp: pl.BlockSpec(shp, lambda i: (0, 0))

    kernel = functools.partial(_attention_pitf_kernel, m, k)

    out = pl.pallas_call(
        kernel,
        out_shape=jax.ShapeDtypeStruct((1, B_pad), jnp.float32),
        grid_spec=pltpu.PrefetchScalarGridSpec(
            num_scalar_prefetch=0,
            grid=(n_tiles,),
            in_specs=[
                vec(2 * k),                 # ui
                vec(m * k),                 # hist (lane-packed)
                vec(4 * k),                 # score slab [tu|ti|ntu|nti]
                full((m * k, m * k)),       # block-diag W_att
                full((1, m * k)),           # tiled b_att
                full((m * k, m)),           # segment selector
                full((3 * k, k)),           # folded W_map
                full((1, k)),               # b_map
            ],
            out_specs=pl.BlockSpec((1, TB), lambda i: (0, i)),
        ),
        compiler_params=pltpu.CompilerParams(
            dimension_semantics=("parallel",)),
    )(ui, hist, s, wblk, batt, sel, wmap_f, bmap)

    return out[0, :B].reshape(B, 1, 1)


def reference_forward(x, params, m):
    """Pure-JAX reference of the PyTorch forward (dropout = identity)."""
    (user_vecs, item_vecs, tag_user_vecs, tag_item_vecs,
     w_att, b_att, w_map, b_map) = params
    u = user_vecs[x[:, 0]]
    it = item_vecs[x[:, 1]]
    tu = tag_user_vecs[x[:, 2]]
    ti = tag_item_vecs[x[:, 2]]
    ntu = tag_user_vecs[x[:, 3]]
    nti = tag_item_vecs[x[:, 3]]
    hist = tag_user_vecs[x[:, -m:]]                               # (B, m, k)
    tag_h = jax.nn.relu(jnp.einsum('bmk,kj->bmj', hist, w_att) + b_att)
    alpha = jax.nn.softmax(jnp.einsum('bmk,bk->bm', tag_h, u), axis=1)
    h = jnp.einsum('bm,bmk->bk', alpha, hist)
    cat = jnp.concatenate([u, h, u - h, u * h], axis=1)
    mix = jax.nn.relu(cat @ w_map + b_map)
    r = (jnp.sum(mix * tu, -1) + jnp.sum(it * ti, -1)
         - jnp.sum(mix * ntu, -1) - jnp.sum(it * nti, -1))
    return r.reshape(-1, 1, 1)


if __name__ == "__main__":
    numUser, numItem, numTag, k, m, B = 11, 13, 17, 32, 3, 8
    init_st = 0.1

    key = jax.random.PRNGKey(0)
    ks = jax.random.split(key, 9)
    user_vecs = init_st * jax.random.normal(ks[0], (numUser, k), jnp.float32)
    item_vecs = init_st * jax.random.normal(ks[1], (numItem, k), jnp.float32)
    tag_user_vecs = init_st * jax.random.normal(ks[2], (numTag, k), jnp.float32)
    tag_item_vecs = init_st * jax.random.normal(ks[3], (numTag, k), jnp.float32)
    # padding_idx=0: row 0 of the tag tables is zero.
    tag_user_vecs = tag_user_vecs.at[0].set(0.0)
    tag_item_vecs = tag_item_vecs.at[0].set(0.0)
    w_att = init_st * jax.random.normal(ks[4], (k, k), jnp.float32)
    b_att = init_st * jax.random.normal(ks[5], (k,), jnp.float32)
    w_map = init_st * jax.random.normal(ks[6], (4 * k, k), jnp.float32)
    b_map = init_st * jax.random.normal(ks[7], (k,), jnp.float32)
    params = (user_vecs, item_vecs, tag_user_vecs, tag_item_vecs,
              w_att, b_att, w_map, b_map)

    # x = [u, i, t, neg_t, hist_1..hist_m]
    ku, ki, kt, kn, kh = jax.random.split(ks[8], 5)
    x = jnp.concatenate([
        jax.random.randint(ku, (B, 1), 0, numUser),
        jax.random.randint(ki, (B, 1), 0, numItem),
        jax.random.randint(kt, (B, 1), 1, numTag),
        jax.random.randint(kn, (B, 1), 1, numTag),
        jax.random.randint(kh, (B, m), 0, numTag),
    ], axis=1).astype(jnp.int32)

    r = attention_pitf_forward(x, params, m)
    r = jax.block_until_ready(r)

    ref = reference_forward(x, params, m)
    assert r.shape == (B, 1, 1), r.shape
    assert jnp.allclose(r, ref, atol=2e-3, rtol=2e-3), (
        float(jnp.max(jnp.abs(r - ref))), r.ravel(), ref.ravel())

    print("KERNEL_OK")
</pallas_src>

<mosaic_0001>
module attributes {stable_mosaic.version = 11 : i64} {
  func.func @_attention_pitf_kernel(%arg0: i32, %arg1: memref<128x64xf32, #tpu.memory_space<vmem>>, %arg2: memref<128x96xf32, #tpu.memory_space<vmem>>, %arg3: memref<128x128xf32, #tpu.memory_space<vmem>>, %arg4: memref<96x96xf32, #tpu.memory_space<vmem>>, %arg5: memref<1x96xf32, #tpu.memory_space<vmem>>, %arg6: memref<96x3xf32, #tpu.memory_space<vmem>>, %arg7: memref<96x32xf32, #tpu.memory_space<vmem>>, %arg8: memref<1x32xf32, #tpu.memory_space<vmem>>, %arg9: memref<1x128xf32, #tpu.memory_space<vmem>>) attributes {dimension_semantics = [#tpu.dimension_semantics<parallel>], iteration_bounds = array<i64: 1>, scalar_prefetch = 0 : i64, scratch_operands = 0 : i64, tpu.core_type = #tpu.core_type<tc>, window_params = [{transform_indices = @transform_0, window_bounds = array<i64: 128, 64>}, {transform_indices = @transform_1, window_bounds = array<i64: 128, 96>}, {transform_indices = @transform_2, window_bounds = array<i64: 128, 128>}, {pipeline_mode = #tpu.pipeline_mode<synchronous>, transform_indices = @transform_3, window_bounds = array<i64: 96, 96>}, {pipeline_mode = #tpu.pipeline_mode<synchronous>, transform_indices = @transform_4, window_bounds = array<i64: 1, 96>}, {pipeline_mode = #tpu.pipeline_mode<synchronous>, transform_indices = @transform_5, window_bounds = array<i64: 96, 3>}, {pipeline_mode = #tpu.pipeline_mode<synchronous>, transform_indices = @transform_6, window_bounds = array<i64: 96, 32>}, {pipeline_mode = #tpu.pipeline_mode<synchronous>, transform_indices = @transform_7, window_bounds = array<i64: 1, 32>}, {transform_indices = @transform_8, window_bounds = array<i64: 1, 128>}]} {
    %c0 = arith.constant 0 : index
    %c0_0 = arith.constant 0 : index
    %0 = vector.load %arg1[%c0, %c0_0] : memref<128x64xf32, #tpu.memory_space<vmem>>, vector<128x64xf32>
    %1 = vector.extract_strided_slice %0 {offsets = [0, 0], sizes = [128, 32], strides = [1, 1]} : vector<128x64xf32> to vector<128x32xf32>
    %2 = vector.extract_strided_slice %0 {offsets = [0, 32], sizes = [128, 32], strides = [1, 1]} : vector<128x64xf32> to vector<128x32xf32>
    %c0_1 = arith.constant 0 : index
    %c0_2 = arith.constant 0 : index
    %3 = vector.load %arg2[%c0_1, %c0_2] : memref<128x96xf32, #tpu.memory_space<vmem>>, vector<128x96xf32>
    %c0_3 = arith.constant 0 : index
    %c0_4 = arith.constant 0 : index
    %4 = vector.load %arg4[%c0_3, %c0_4] : memref<96x96xf32, #tpu.memory_space<vmem>>, vector<96x96xf32>
    %cst = arith.constant dense<0.000000e+00> : vector<128x96xf32>
    %5 = tpu.matmul %3, %4, %cst {dimension_numbers = #tpu.dot_dimension_numbers<[1], [0], [0], [1], [0, 0, 1, 1], [], []>} : vector<128x96xf32>, vector<96x96xf32>, vector<128x96xf32> -> vector<128x96xf32>
    %c0_5 = arith.constant 0 : index
    %c0_6 = arith.constant 0 : index
    %6 = vector.load %arg5[%c0_5, %c0_6] : memref<1x96xf32, #tpu.memory_space<vmem>>, vector<1x96xf32>
    %7 = vector.broadcast %6 : vector<1x96xf32> to vector<128x96xf32>
    %8 = arith.addf %5, %7 : vector<128x96xf32>
    %cst_7 = arith.constant 0.000000e+00 : f32
    %9 = vector.broadcast %cst_7 : f32 to vector<128x96xf32>
    %10 = arith.maximumf %8, %9 : vector<128x96xf32>
    %11 = tpu.concatenate %1, %1, %1 in 1 : vector<128x32xf32>, vector<128x32xf32>, vector<128x32xf32> -> vector<128x96xf32>
    %12 = arith.mulf %10, %11 : vector<128x96xf32>
    %c0_8 = arith.constant 0 : index
    %c0_9 = arith.constant 0 : index
    %13 = vector.load %arg6[%c0_8, %c0_9] : memref<96x3xf32, #tpu.memory_space<vmem>>, vector<96x3xf32>
    %cst_10 = arith.constant dense<0.000000e+00> : vector<128x3xf32>
    %14 = tpu.matmul %12, %13, %cst_10 {dimension_numbers = #tpu.dot_dimension_numbers<[1], [0], [0], [1], [0, 0, 1, 1], [], []>} : vector<128x96xf32>, vector<96x3xf32>, vector<128x3xf32> -> vector<128x3xf32>
    %cst_11 = arith.constant dense<0xFF800000> : vector<128xf32>
    %15 = vector.multi_reduction <maximumf>, %14, %cst_11 [1] : vector<128x3xf32> to vector<128xf32>
    %16 = vector.shape_cast %15 : vector<128xf32> to vector<128x1xf32>
    %17 = vector.broadcast %16 : vector<128x1xf32> to vector<128x3xf32>
    %18 = arith.subf %14, %17 : vector<128x3xf32>
    %19 = math.exp %18 : vector<128x3xf32>
    %cst_12 = arith.constant dense<0.000000e+00> : vector<128xf32>
    %20 = vector.multi_reduction <add>, %19, %cst_12 [1] : vector<128x3xf32> to vector<128xf32>
    %21 = vector.shape_cast %20 : vector<128xf32> to vector<128x1xf32>
    %22 = tpu.reciprocal %21 {approx = true} : vector<128x1xf32> -> vector<128x1xf32>
    %23 = vector.broadcast %22 : vector<128x1xf32> to vector<128x3xf32>
    %24 = arith.mulf %19, %23 : vector<128x3xf32>
    %25 = vector.extract_strided_slice %24 {offsets = [0, 0], sizes = [128, 1], strides = [1, 1]} : vector<128x3xf32> to vector<128x1xf32>
    %26 = vector.extract_strided_slice %3 {offsets = [0, 0], sizes = [128, 32], strides = [1, 1]} : vector<128x96xf32> to vector<128x32xf32>
    %27 = vector.broadcast %25 : vector<128x1xf32> to vector<128x32xf32>
    %28 = arith.mulf %27, %26 : vector<128x32xf32>
    %29 = vector.extract_strided_slice %24 {offsets = [0, 1], sizes = [128, 1], strides = [1, 1]} : vector<128x3xf32> to vector<128x1xf32>
    %30 = vector.extract_strided_slice %3 {offsets = [0, 32], sizes = [128, 32], strides = [1, 1]} : vector<128x96xf32> to vector<128x32xf32>
    %31 = vector.broadcast %29 : vector<128x1xf32> to vector<128x32xf32>
    %32 = arith.mulf %31, %30 : vector<128x32xf32>
    %33 = arith.addf %28, %32 : vector<128x32xf32>
    %34 = vector.extract_strided_slice %24 {offsets = [0, 2], sizes = [128, 1], strides = [1, 1]} : vector<128x3xf32> to vector<128x1xf32>
    %35 = vector.extract_strided_slice %3 {offsets = [0, 64], sizes = [128, 32], strides = [1, 1]} : vector<128x96xf32> to vector<128x32xf32>
    %36 = vector.broadcast %34 : vector<128x1xf32> to vector<128x32xf32>
    %37 = arith.mulf %36, %35 : vector<128x32xf32>
    %38 = arith.addf %33, %37 : vector<128x32xf32>
    %39 = arith.mulf %1, %38 : vector<128x32xf32>
    %40 = tpu.concatenate %1, %38, %39 in 1 : vector<128x32xf32>, vector<128x32xf32>, vector<128x32xf32> -> vector<128x96xf32>
    %c0_13 = arith.constant 0 : index
    %c0_14 = arith.constant 0 : index
    %41 = vector.load %arg7[%c0_13, %c0_14] : memref<96x32xf32, #tpu.memory_space<vmem>>, vector<96x32xf32>
    %cst_15 = arith.constant dense<0.000000e+00> : vector<128x32xf32>
    %42 = tpu.matmul %40, %41, %cst_15 {dimension_numbers = #tpu.dot_dimension_numbers<[1], [0], [0], [1], [0, 0, 1, 1], [], []>} : vector<128x96xf32>, vector<96x32xf32>, vector<128x32xf32> -> vector<128x32xf32>
    %c0_16 = arith.constant 0 : index
    %c0_17 = arith.constant 0 : index
    %43 = vector.load %arg8[%c0_16, %c0_17] : memref<1x32xf32, #tpu.memory_space<vmem>>, vector<1x32xf32>
    %44 = vector.broadcast %43 : vector<1x32xf32> to vector<128x32xf32>
    %45 = arith.addf %42, %44 : vector<128x32xf32>
    %cst_18 = arith.constant 0.000000e+00 : f32
    %46 = vector.broadcast %cst_18 : f32 to vector<128x32xf32>
    %47 = arith.maximumf %45, %46 : vector<128x32xf32>
    %cst_19 = arith.constant 0.000000e+00 : f32
    %48 = vector.broadcast %cst_19 : f32 to vector<128x32xf32>
    %49 = arith.subf %48, %47 : vector<128x32xf32>
    %cst_20 = arith.constant 0.000000e+00 : f32
    %50 = vector.broadcast %cst_20 : f32 to vector<128x32xf32>
    %51 = arith.subf %50, %2 : vector<128x32xf32>
    %52 = tpu.concatenate %47, %2, %49, %51 in 1 : vector<128x32xf32>, vector<128x32xf32>, vector<128x32xf32>, vector<128x32xf32> -> vector<128x128xf32>
    %c0_21 = arith.constant 0 : index
    %c0_22 = arith.constant 0 : index
    %53 = vector.load %arg3[%c0_21, %c0_22] : memref<128x128xf32, #tpu.memory_space<vmem>>, vector<128x128xf32>
    %54 = arith.mulf %52, %53 : vector<128x128xf32>
    %cst_23 = arith.constant dense<0.000000e+00> : vector<128xf32>
    %55 = vector.multi_reduction <add>, %54, %cst_23 [1] : vector<128x128xf32> to vector<128xf32>
    %56 = vector.shape_cast %55 : vector<128xf32> to vector<1x128xf32>
    %c0_24 = arith.constant 0 : index
    %c0_25 = arith.constant 0 : index
    %57 = vector.load %arg9[%c0_24, %c0_25] : memref<1x128xf32, #tpu.memory_space<vmem>>, vector<1x128xf32>
    tpu.vector_store %arg9[%c0_24, %c0_25], %56 {strides = array<i32>} : memref<1x128xf32, #tpu.memory_space<vmem>>, vector<1x128xf32>,
    return
  }
  func.func @transform_0(%arg0: i32) -> (i32, i32) {
    %c0_i32 = arith.constant 0 : i32
    %c0_i32_0 = arith.constant 0 : i32
    return %arg0, %c0_i32 : i32, i32
  }
  func.func @transform_1(%arg0: i32) -> (i32, i32) {
    %c0_i32 = arith.constant 0 : i32
    %c0_i32_0 = arith.constant 0 : i32
    return %arg0, %c0_i32 : i32, i32
  }
  func.func @transform_2(%arg0: i32) -> (i32, i32) {
    %c0_i32 = arith.constant 0 : i32
    %c0_i32_0 = arith.constant 0 : i32
    return %arg0, %c0_i32 : i32, i32
  }
  func.func @transform_3(%arg0: i32) -> (i32, i32) {
    %c0_i32 = arith.constant 0 : i32
    %c0_i32_0 = arith.constant 0 : i32
    %c0_i32_1 = arith.constant 0 : i32
    return %c0_i32, %c0_i32_0 : i32, i32
  }
  func.func @transform_4(%arg0: i32) -> (i32, i32) {
    %c0_i32 = arith.constant 0 : i32
    %c0_i32_0 = arith.constant 0 : i32
    %c0_i32_1 = arith.constant 0 : i32
    return %c0_i32, %c0_i32_0 : i32, i32
  }
  func.func @transform_5(%arg0: i32) -> (i32, i32) {
    %c0_i32 = arith.constant 0 : i32
    %c0_i32_0 = arith.constant 0 : i32
    %c0_i32_1 = arith.constant 0 : i32
    return %c0_i32, %c0_i32_0 : i32, i32
  }
  func.func @transform_6(%arg0: i32) -> (i32, i32) {
    %c0_i32 = arith.constant 0 : i32
    %c0_i32_0 = arith.constant 0 : i32
    %c0_i32_1 = arith.constant 0 : i32
    return %c0_i32, %c0_i32_0 : i32, i32
  }
  func.func @transform_7(%arg0: i32) -> (i32, i32) {
    %c0_i32 = arith.constant 0 : i32
    %c0_i32_0 = arith.constant 0 : i32
    %c0_i32_1 = arith.constant 0 : i32
    return %c0_i32, %c0_i32_0 : i32, i32
  }
  func.func @transform_8(%arg0: i32) -> (i32, i32) {
    %c0_i32 = arith.constant 0 : i32
    %c0_i32_0 = arith.constant 0 : i32
    return %c0_i32, %arg0 : i32, i32
  }
}

</mosaic_0001>

<bundles_post_ra>
// kernel: tpu_custom_call.1
= control target key start
LH: loop header
LB: loop body
LE: loop exit
PB: predicated region body
PF: predicated region fallthrough
CT: control target
= control target key end

     0   :  { %s2037_s15 = smov 32   ;;  %s3496_s0 = inlined_call_operand.vmem [shape: f32[128,64], index: 0, kind: input, shape index: {}]   ;;  %s3497_s1 = inlined_call_operand.vmem [shape: f32[128,96], index: 1, kind: input, shape index: {}]   ;;  %s3498_s2 = inlined_call_operand.vmem [shape: f32[128,128], index: 2, kind: input, shape index: {}]   ;;  %s3499_s3 = inlined_call_operand.vmem [shape: f32[96,96], index: 3, kind: input, shape index: {}]   ;;  %s3500_s4 = inlined_call_operand.vmem [shape: f32[1,96], index: 4, kind: input, shape index: {}]   ;;  %s3501_s5 = inlined_call_operand.vmem [shape: f32[96,3], index: 5, kind: input, shape index: {}]   ;;  %s3502_s6 = inlined_call_operand.vmem [shape: f32[96,32], index: 6, kind: input, shape index: {}]   ;;  %s3503_s7 = inlined_call_operand.vmem [shape: f32[1,32], index: 7, kind: input, shape index: {}]   ;;  %s3504_s8 = inlined_call_operand.hbm [shape: f32[1,128], index: 8, kind: output, shape index: {}]  }
   0x1   :  { %v73_v0 = vld [vmem:[%s3499_s3 + $0x58] sm:$0xff]  ;;  %v2095_v1 = vld [vmem:[%s3496_s0 + $0x20] sm:$0xff]  ;;  %v2100_v2 = vld [vmem:[%s3496_s0 + $0x10] sm:$0xff] }
   0x2   :  { %131 = vmatpush.msra.mxu0 %v73_v0  ;;  %1826 = vmatpush.msra.mxu3 %v73_v0  ;;  %v2105_v3 = vld [vmem:[%s3496_s0] sm:$0xff]  ;;  %v72_v4 = vld [vmem:[%s3499_s3 + $0x50] sm:$0xff]  ;;  %v71_v5 = vld [vmem:[%s3499_s3 + $0x48] sm:$0xff] }
   0x3   :  { %232 = vrot.lane.b32.xlu2 %v2095_v1, %s2037_s15  ;;  %228 = vrot.lane.b32.xlu1 %v2100_v2, %s2037_s15  ;;  %v70_v6 = vld [vmem:[%s3499_s3 + $0x40] sm:$0xff]  ;;  %v69_v7 = vld [vmem:[%s3499_s3 + $0x38] sm:$0xff] }
   0x4   :  { %224 = vrot.lane.b32.xlu0 %v2105_v3, %s2037_s15  ;;  %132 = vmatpush.msra.mxu0 %v72_v4  ;;  %v2128_v8 = vld [vmem:[%s3496_s0 + $0x28] sm:$0xff]  ;;  %v2133_v9 = vld [vmem:[%s3496_s0 + $0x18] sm:$0xff]  ;;  %v68_v11 = vld [vmem:[%s3499_s3 + $0x30] sm:$0xff] }
   0x5   :  { %1827 = vmatpush.msra.mxu3 %v72_v4  ;;  %v2138_v10 = vld [vmem:[%s3496_s0 + $0x8] sm:$0xff] }
   0x6   :  { %133 = vmatpush.msra.mxu0 %v71_v5  ;;  %v67_v12 = vld [vmem:[%s3499_s3 + $0x28] sm:$0xff] }
   0x7   :  { %1828 = vmatpush.msra.mxu3 %v71_v5 }
   0x8   :  { %134 = vmatpush.msra.mxu0 %v70_v6 }
   0x9   :  { %1829 = vmatpush.msra.mxu3 %v70_v6 }
   0xa   :  { %135 = vmatpush.msra.mxu0 %v69_v7 }
   0xb   :  { %1830 = vmatpush.msra.mxu3 %v69_v7  ;;  %234 = vrot.lane.b32.xlu2 %v2128_v8, %s2037_s15 }
   0xc   :  { %230 = vrot.lane.b32.xlu1 %v2133_v9, %s2037_s15  ;;  %226 = vrot.lane.b32.xlu0 %v2138_v10, %s2037_s15 }
   0xd   :  { %136 = vmatpush.msra.mxu0 %v68_v11  ;;  %1831 = vmatpush.msra.mxu3 %v68_v11 }
   0xe   :  { %13 = vsyncpa [#allocation3], 0  ;;  %v66_v13 = vld [vmem:[%s3499_s3 + $0x20] sm:$0xff]  ;;  %v65_v14 = vld [vmem:[%s3499_s3 + $0x18] sm:$0xff]  ;;  %vm78_vm0 = vcmask 785408   ;;  %s2038_s9 = smov 64  }
   0xf   :  { %137 = vmatpush.msra.mxu0 %v67_v12  ;;  %1832 = vmatpush.msra.mxu3 %v67_v12  ;;  %v2161_v15 = vld [vmem:[%s3496_s0 + $0x40] sm:$0xff]  ;;  %v2166_v16 = vld [vmem:[%s3496_s0 + $0x38] sm:$0xff]  ;;  %v2171_v17 = vld [vmem:[%s3496_s0 + $0x30] sm:$0xff]  ;;  %vm320_vm1 = vcmask 261120   ;;  %vm337_vm2 = vcmask 523264   ;;  %vm495_vm3 = vcmask 23552  }
  0x10   :  { %v64_v18 = vld [vmem:[%s3499_s3 + $0x10] sm:$0xff]  ;;  %v63_v19 = vld [vmem:[%s3499_s3 + $0x8] sm:$0xff]  ;;  %v62_v20 = vld [vmem:[%s3499_s3] sm:$0xff]  ;;  %s2042_s16 = smov 96   ;;  %vm1702_vm4 = vcmask 130112   ;;  %vm1706_vm5 = vcmask 195712  }
  0x11   :  { %138 = vmatpush.msra.mxu0 %v66_v13  ;;  %1833 = vmatpush.msra.mxu3 %v66_v13  ;;  %v46_v21 = vld [vmem:[%s3497_s1] sm:$0xff]  ;;  %v2197_v23 = vld [vmem:[%s3496_s0 + $0x58] sm:$0xff]  ;;  %v2202_v24 = vld [vmem:[%s3496_s0 + $0x50] sm:$0xff]  ;;  %vm1710_vm6 = vcmask 261312   ;;  %vm1714_vm7 = vcmask 326912   ;;  %vm1718_vm8 = vcmask 392512  }
  0x12   :  { %v58_v22 = vld [vmem:[%s3497_s1 + $0x60] sm:$0xff]  ;;  %v2208_v25 = vld [vmem:[%s3496_s0 + $0x48] sm:$0xff]  ;;  %v2226_v28 = vld [vmem:[%s3496_s0 + $0x70] sm:$0xff]  ;;  %vm1722_vm9 = vcmask 458112   ;;  %vm1726_vm10 = vcmask 523712   ;;  %vm1730_vm11 = vcmask 589312  }
  0x13   :  { %139 = vmatpush.msra.mxu0 %v65_v14  ;;  %1834 = vmatpush.msra.mxu3 %v65_v14  ;;  %v47_v26 = vld [vmem:[%s3497_s1 + $0x8] sm:$0xff]  ;;  %v2237_v30 = vld [vmem:[%s3496_s0 + $0x60] sm:$0xff]  ;;  %v48_v31 = vld [vmem:[%s3497_s1 + $0x10] sm:$0xff]  ;;  %vm1734_vm12 = vcmask 654912   ;;  %vm1738_vm13 = vcmask 720512   ;;  %vm1742_vm14 = vcmask 786112  }
  0x14   :  { %240 = vrot.lane.b32.xlu2 %v2161_v15, %s2037_s15  ;;  %238 = vrot.lane.b32.xlu1 %v2166_v16, %s2037_s15  ;;  %v59_v27 = vld [vmem:[%s3497_s1 + $0x68] sm:$0xff]  ;;  %v60_v32 = vld [vmem:[%s3497_s1 + $0x70] sm:$0xff]  ;;  %vm1746_vm15 = vcmask 851712  }
  0x15   :  { %236 = vrot.lane.b32.xlu0 %v2171_v17, %s2037_s15  ;;  %140 = vmatpush.msra.mxu0 %v64_v18  ;;  %v2231_v29 = vld [vmem:[%s3496_s0 + $0x68] sm:$0xff]  ;;  %v2256_v33 = vld [vmem:[%s3496_s0 + $0x78] sm:$0xff]  ;;  %v50_v36 = vld [vmem:[%s3497_s1 + $0x20] sm:$0xff] }
  0x16   :  { %1835 = vmatpush.msra.mxu3 %v64_v18  ;;  %v49_v34 = vld [vmem:[%s3497_s1 + $0x18] sm:$0xff]  ;;  %v51_v37 = vld [vmem:[%s3497_s1 + $0x28] sm:$0xff]  ;;  %v52_v38 = vld [vmem:[%s3497_s1 + $0x30] sm:$0xff] }
  0x17   :  { %141 = vmatpush.msra.mxu0 %v63_v19  ;;  %v61_v35 = vld [vmem:[%s3497_s1 + $0x78] sm:$0xff]  ;;  %v54_v40 = vld [vmem:[%s3497_s1 + $0x40] sm:$0xff]  ;;  %v55_v41 = vld [vmem:[%s3497_s1 + $0x48] sm:$0xff] }
  0x18   :  { %1836 = vmatpush.msra.mxu3 %v63_v19  ;;  %v53_v39 = vld [vmem:[%s3497_s1 + $0x38] sm:$0xff]  ;;  %v56_v42 = vld [vmem:[%s3497_s1 + $0x50] sm:$0xff]  ;;  %v379_v47 = vld [vmem:[%s3501_s5 + $0x48] sm:$0xff] }
  0x19   :  { %142 = vmatpush.msra.mxu0 %v62_v20  ;;  %v381_v43 = vld [vmem:[%s3501_s5 + $0x58] sm:$0xff]  ;;  %v380_v44 = vld [vmem:[%s3501_s5 + $0x50] sm:$0xff]  ;;  %v378_v48 = vld [vmem:[%s3501_s5 + $0x40] sm:$0xff] }
  0x1a   :  { %1837 = vmatpush.msra.mxu3 %v62_v20  ;;  %1778 = vmatmul.msk.f32.vlgmr.msra.gmra.mxu0 %vm78_vm0, %v46_v21  ;;  %v57_v46 = vld [vmem:[%s3497_s1 + $0x58] sm:$0xff]  ;;  %v376_v50 = vld [vmem:[%s3501_s5 + $0x30] sm:$0xff]  ;;  %v375_v54 = vld [vmem:[%s3501_s5 + $0x28] sm:$0xff] }
  0x1b   :  { %1790 = vmatmul.msk.f32.vlgmr.msra.gmra.mxu3 %vm78_vm0, %v58_v22  ;;  %434 = vmatpush.msra.mxu1 %v381_v43  ;;  %v377_v49 = vld [vmem:[%s3501_s5 + $0x38] sm:$0xff]  ;;  %v374_v55 = vld [vmem:[%s3501_s5 + $0x20] sm:$0xff]  ;;  %v372_v57 = vld [vmem:[%s3501_s5 + $0x10] sm:$0xff] }
  0x1c   :  { %246 = vrot.lane.b32.xlu2 %v2197_v23, %s2037_s15  ;;  %244 = vrot.lane.b32.xlu1 %v2202_v24, %s2037_s15  ;;  %v373_v56 = vld [vmem:[%s3501_s5 + $0x18] sm:$0xff]  ;;  %v371_v61 = vld [vmem:[%s3501_s5 + $0x8] sm:$0xff] }
  0x1d   :  { %242 = vrot.lane.b32.xlu0 %v2208_v25, %s2037_s15  ;;  %1838 = vmatpush.msrb.mxu3 %v381_v43  ;;  %v370_v62 = vld [vmem:[%s3501_s5] sm:$0xff] }
  0x1e   :  { %435 = vmatpush.msra.mxu1 %v380_v44  ;;  %v2390_v11 = vld [vmem:[%s3500_s4] ss:$0 sm:$0xff] }
  0x1f   :  { %1839 = vmatpush.msrb.mxu3 %v380_v44 }
  0x20   :  { %436 = vmatpush.msra.mxu1 %v379_v47 }
  0x21   :  { %1840 = vmatpush.msrb.mxu3 %v379_v47 }
  0x22   :  { %1779 = vmatmul.msk.f32.gmra.mxu0 %vm78_vm0, %v47_v26  ;;  %437 = vmatpush.msra.mxu1 %v378_v48 }
  0x23   :  { %1791 = vmatmul.msk.f32.gmra.mxu3 %vm78_vm0, %v59_v27 }
  0x24   :  { %252 = vrot.lane.b32.xlu2 %v2226_v28, %s2037_s15  ;;  %250 = vrot.lane.b32.xlu1 %v2231_v29, %s2037_s15 }
  0x25   :  { %248 = vrot.lane.b32.xlu0 %v2237_v30, %s2037_s15  ;;  %1841 = vmatpush.msrb.mxu3 %v378_v48 }
  0x26   :  { %438 = vmatpush.msra.mxu1 %v377_v49 }
  0x27   :  { %1842 = vmatpush.msrb.mxu3 %v377_v49 }
  0x28   :  { %439 = vmatpush.msra.mxu1 %v376_v50 }
  0x29   :  { %1843 = vmatpush.msrb.mxu3 %v376_v50 }
  0x2a   :  { %1780 = vmatmul.msk.f32.gmra.mxu0 %vm78_vm0, %v48_v31  ;;  %440 = vmatpush.msra.mxu1 %v375_v54 }
  0x2b   :  { %1792 = vmatmul.msk.f32.gmra.mxu3 %vm78_vm0, %v60_v32 }
  0x2c   :  { %274 = vrot.lane.b32.xlu2 %v2138_v10, %s2038_s9  ;;  %272 = vrot.lane.b32.xlu1 %v2105_v3, %s2038_s9 }
  0x2d   :  { %254 = vrot.lane.b32.xlu0 %v2256_v33, %s2037_s15  ;;  %1844 = vmatpush.msrb.mxu3 %v375_v54 }
  0x2e   :  { %441 = vmatpush.msra.mxu1 %v374_v55 }
  0x2f   :  { %1845 = vmatpush.msrb.mxu3 %v374_v55 }
  0x30   :  { %442 = vmatpush.msra.mxu1 %v373_v56 }
  0x31   :  { %1846 = vmatpush.msrb.mxu3 %v373_v56 }
  0x32   :  { %1781 = vmatmul.msk.f32.gmra.mxu0 %vm78_vm0, %v49_v34  ;;  %443 = vmatpush.msra.mxu1 %v372_v57 }
  0x33   :  { %1793 = vmatmul.msk.f32.gmra.mxu3 %vm78_vm0, %v61_v35 }
  0x34   :  { %280 = vrot.lane.b32.xlu2 %v2095_v1, %s2038_s9  ;;  %278 = vrot.lane.b32.xlu1 %v2133_v9, %s2038_s9 }
  0x35   :  { %276 = vrot.lane.b32.xlu0 %v2100_v2, %s2038_s9  ;;  %1847 = vmatpush.msrb.mxu3 %v372_v57 }
  0x36   :  { %444 = vmatpush.msra.mxu1 %v371_v61 }
  0x37   :  { %1848 = vmatpush.msrb.mxu3 %v371_v61 }
  0x38   :  { %445 = vmatpush.msra.mxu1 %v370_v62 }
  0x39   :  { %1849 = vmatpush.msrb.mxu3 %v370_v62 }
  0x3a   :  { %1782 = vmatmul.msk.f32.gmra.mxu0 %vm78_vm0, %v50_v36 }
  0x3c   :  { %286 = vrot.lane.b32.xlu2 %v2166_v16, %s2038_s9  ;;  %284 = vrot.lane.b32.xlu1 %v2171_v17, %s2038_s9 }
  0x3d   :  { %282 = vrot.lane.b32.xlu0 %v2128_v8, %s2038_s9 }
  0x42   :  { %1783 = vmatmul.msk.f32.gmra.mxu0 %vm78_vm0, %v51_v37 }
  0x44   :  { %292 = vrot.lane.b32.xlu2 %v2202_v24, %s2038_s9  ;;  %290 = vrot.lane.b32.xlu1 %v2208_v25, %s2038_s9 }
  0x45   :  { %288 = vrot.lane.b32.xlu0 %v2161_v15, %s2038_s9 }
  0x4a   :  { %1784 = vmatmul.msk.f32.gmra.mxu0 %vm78_vm0, %v52_v38 }
  0x4c   :  { %298 = vrot.lane.b32.xlu2 %v2231_v29, %s2038_s9  ;;  %296 = vrot.lane.b32.xlu1 %v2237_v30, %s2038_s9 }
  0x4d   :  { %294 = vrot.lane.b32.xlu0 %v2197_v23, %s2038_s9 }
  0x52   :  { %1785 = vmatmul.msk.f32.gmra.mxu0 %vm78_vm0, %v53_v39 }
  0x54   :  { %302 = vrot.lane.b32.xlu1 %v2256_v33, %s2038_s9 }
  0x55   :  { %300 = vrot.lane.b32.xlu0 %v2226_v28, %s2038_s9 }
  0x5a   :  { %1786 = vmatmul.msk.f32.gmra.mxu0 %vm78_vm0, %v54_v40 }
  0x5d   :  { %v2334_v45 = vpop.permute.xlu2 %232 }
  0x62   :  { %1787 = vmatmul.msk.f32.gmra.mxu0 %vm78_vm0, %v55_v41 }
  0x65   :  { %v2353_v51 = vpop.permute.xlu2 %234 }
  0x6a   :  { %1788 = vmatmul.msk.f32.gmra.mxu0 %vm78_vm0, %v56_v42 }
  0x6e   :  { %v2367_v58 = vpop.permute.xlu2 %240 }
  0x72   :  { %1789 = vmatmul.msk.f32.gmra.mxu0 %vm78_vm0, %v57_v46 }
  0x75   :  { %v229_v52 = vpop.permute.xlu1 %228 }
  0x76   :  { %v225_v53 = vpop.permute.xlu0 %224  ;;  %v2379_v4 = vpop.permute.xlu2 %246  ;;  %v323_v44 = vsel %vm320_vm1, %v2100_v2, %v229_v52 }
  0x77   :  { %v321_v21 = vsel %vm320_vm1, %v2105_v3, %v225_v53 }
  0x7e   :  { %v231_v59 = vpop.permute.xlu1 %230  ;;  %v227_v60 = vpop.permute.xlu0 %226 }
  0x7f   :  { %v2385_v7 = vpop.permute.xlu2 %252  ;;  %v322_v35 = vsel %vm320_vm1, %v2138_v10, %v227_v60  ;;  %v324_v56 = vsel %vm320_vm1, %v2133_v9, %v231_v59  ;;  %v325_v9 = vsel %vm320_vm1, %v2095_v1, %v2334_v45 }
  0x86   :  { %v2375_v63 = vpop.permute.xlu1 %238 }
  0x87   :  { %v2377_v0 = vpop.permute.xlu0 %236  ;;  %v275_v19 = vpop.permute.xlu2 %274 }
  0x88   :  { %v339_v37 = vsel %vm337_vm2, %v322_v35, %v275_v19 }
  0x8e   :  { %v2381_v5 = vpop.permute.xlu1 %244 }
  0x8f   :  { %v2383_v6 = vpop.permute.xlu0 %242  ;;  %v281_v38 = vpop.permute.xlu2 %280 }
  0x96   :  { %v2392_v12 = vpop.permute.xlu1 %250 }
  0x97   :  { %v249_v13 = vpop.permute.xlu0 %248  ;;  %v144_v14 = vpop.f32.mrf.mxu0 }
  0x98   :  { %v145_v18 = vadd.f32 %v2390_v11, %v144_v14  ;;  %v2410_v49 = vpop.permute.xlu2 %286 }
  0x9a   :  { %v192_v20 = vmax.f32 %v145_v18, 0.0 }
  0x9e   :  { %v273_v22 = vpop.permute.xlu1 %272  ;;  %v180_v54 = vpop.f32.mrf.mxu3 }
  0x9f   :  { %v2397_v26 = vpop.permute.xlu0 %254  ;;  %v338_v27 = vsel %vm337_vm2, %v321_v21, %v273_v22  ;;  %v147_v31 = vpop.f32.mrf.mxu0  ;;  %v181_v61 = vadd.f32 %v2390_v11, %v180_v54  ;;  %v333_v21 = vsel %vm320_vm1, %v2237_v30, %v249_v13 }
  0xa0   :  { %v354_v32 = vmul.f32 %v338_v27, %v192_v20  ;;  %v148_v34 = vadd.f32 %v2390_v11, %v147_v31  ;;  %v2423_v18 = vpop.permute.xlu2 %292  ;;  %v342_v27 = vsel %vm337_vm2, %v325_v9, %v281_v38  ;;  %v326_v38 = vsel %vm320_vm1, %v2128_v8, %v2353_v51 }
  0xa1   :  { %v204_v59 = vmax.f32 %v181_v61, 0.0  ;;  %v335_v8 = vsel %vm320_vm1, %v2226_v28, %v2385_v7  ;;  %v336_v28 = vsel %vm320_vm1, %v2256_v33, %v2397_v26  ;;  %v329_v26 = vsel %vm320_vm1, %v2161_v15, %v2367_v58 }
  0xa2   :  { %1794 = vmatmul.msk.f32.vlgmr.msra.gmra.mxu1 %vm78_vm0, %v354_v32  ;;  %v193_v36 = vmax.f32 %v148_v34, 0.0 }
  0xa4   :  { %v355_v41 = vmul.f32 %v339_v37, %v193_v36 }
  0xa6   :  { %v279_v3 = vpop.permute.xlu1 %278  ;;  %v183_v19 = vpop.f32.mrf.mxu3 }
  0xa7   :  { %v277_v39 = vpop.permute.xlu0 %276  ;;  %v150_v40 = vpop.f32.mrf.mxu0  ;;  %v341_v52 = vsel %vm337_vm2, %v324_v56, %v279_v3  ;;  %v184_v34 = vadd.f32 %v2390_v11, %v183_v19 }
  0xa8   :  { %v151_v42 = vadd.f32 %v2390_v11, %v150_v40  ;;  %v340_v47 = vsel %vm337_vm2, %v323_v44, %v277_v39  ;;  %v299_v45 = vpop.permute.xlu2 %298  ;;  %v334_v39 = vsel %vm320_vm1, %v2231_v29, %v2392_v12 }
  0xa9   :  { %v205_v30 = vmax.f32 %v184_v34, 0.0  ;;  %v351_v40 = vsel %vm337_vm2, %v334_v39, %v299_v45 }
  0xaa   :  { %1795 = vmatmul.msk.f32.gmra.mxu1 %vm78_vm0, %v355_v41  ;;  %v194_v43 = vmax.f32 %v151_v42, 0.0 }
  0xac   :  { %v356_v50 = vmul.f32 %v340_v47, %v194_v43  ;;  %v367_v43 = vmul.f32 %v351_v40, %v205_v30 }
  0xae   :  { %v285_v46 = vpop.permute.xlu1 %284  ;;  %v186_v1 = vpop.f32.mrf.mxu3 }
  0xaf   :  { %v283_v10 = vpop.permute.xlu0 %282  ;;  %v153_v48 = vpop.f32.mrf.mxu0  ;;  %v187_v44 = vadd.f32 %v2390_v11, %v186_v1 }
  0xb0   :  { %v154_v53 = vadd.f32 %v2390_v11, %v153_v48  ;;  %v343_v41 = vsel %vm337_vm2, %v326_v38, %v283_v10 }
  0xb1   :  { %v206_v29 = vmax.f32 %v187_v44, 0.0 }
  0xb2   :  { %1796 = vmatmul.msk.f32.gmra.mxu1 %vm78_vm0, %v356_v50  ;;  %v195_v55 = vmax.f32 %v154_v53, 0.0  ;;  %v327_v53 = vsel %vm320_vm1, %v2171_v17, %v2377_v0 }
  0xb3   :  { %v344_v54 = vsel %vm337_vm2, %v327_v53, %v285_v46  ;;  %v328_v46 = vsel %vm320_vm1, %v2166_v16, %v2375_v63 }
  0xb4   :  { %v357_v62 = vmul.f32 %v341_v52, %v195_v55 }
  0xb6   :  { %v2416_v57 = vpop.permute.xlu1 %290  ;;  %v189_v12 = vpop.f32.mrf.mxu3 }
  0xb7   :  { %v2418_v2 = vpop.permute.xlu0 %288  ;;  %v156_v60 = vpop.f32.mrf.mxu0  ;;  %v190_v56 = vadd.f32 %v2390_v11, %v189_v12 }
  0xb8   :  { %v157_v14 = vadd.f32 %v2390_v11, %v156_v60  ;;  %v346_v16 = vsel %vm337_vm2, %v329_v26, %v2418_v2  ;;  %v331_v2 = vsel %vm320_vm1, %v2202_v24, %v2381_v5 }
  0xb9   :  { %v207_v7 = vmax.f32 %v190_v56, 0.0 }
  0xba   :  { %1797 = vmatmul.msk.f32.gmra.mxu1 %vm78_vm0, %v357_v62  ;;  %v196_v20 = vmax.f32 %v157_v14, 0.0  ;;  %v345_v14 = vsel %vm337_vm2, %v328_v46, %v2410_v49 }
  0xbc   :  { %v358_v35 = vmul.f32 %v342_v27, %v196_v20  ;;  %v330_v27 = vsel %vm320_vm1, %v2208_v25, %v2383_v6 }
  0xbe   :  { %v297_v22 = vpop.permute.xlu1 %296 }
  0xbf   :  { %v350_v31 = vsel %vm337_vm2, %v333_v21, %v297_v22  ;;  %v159_v32 = vpop.f32.mrf.mxu0  ;;  %v2434_v37 = vpop.permute.xlu0 %294 }
  0xc0   :  { %v366_v36 = vmul.f32 %v350_v31, %v204_v59  ;;  %v160_v3 = vadd.f32 %v2390_v11, %v159_v32  ;;  %v347_v31 = vsel %vm337_vm2, %v330_v27, %v2416_v57  ;;  %v332_v57 = vsel %vm320_vm1, %v2197_v23, %v2379_v4 }
  0xc1   :  { %v349_v1 = vsel %vm337_vm2, %v332_v57, %v2434_v37 }
  0xc2   :  { %1798 = vmatmul.msk.f32.gmra.mxu1 %vm78_vm0, %v358_v35  ;;  %1806 = vmatmul.msk.f32.vlgmr.msrb.gmra.mxu3 %vm78_vm0, %v366_v36  ;;  %v197_v13 = vmax.f32 %v160_v3, 0.0  ;;  %v348_v35 = vsel %vm337_vm2, %v331_v2, %v2423_v18 }
  0xc4   :  { %v359_v47 = vmul.f32 %v343_v41, %v197_v13 }
  0xc6   :  { %v303_v62 = vpop.permute.xlu1 %302 }
  0xc7   :  { %v162_v42 = vpop.f32.mrf.mxu0  ;;  %v301_v50 = vpop.permute.xlu0 %300  ;;  %v353_v0 = vsel %vm337_vm2, %v336_v28, %v303_v62 }
  0xc8   :  { %v163_v48 = vadd.f32 %v2390_v11, %v162_v42  ;;  %v352_v10 = vsel %vm337_vm2, %v335_v8, %v301_v50  ;;  %v369_v9 = vmul.f32 %v353_v0, %v207_v7 }
  0xc9   :  { %v368_v52 = vmul.f32 %v352_v10, %v206_v29 }
  0xca   :  { %1799 = vmatmul.msk.f32.gmra.mxu1 %vm78_vm0, %v359_v47  ;;  %1807 = vmatmul.msk.f32.gmra.mxu3 %vm78_vm0, %v367_v43  ;;  %v198_v51 = vmax.f32 %v163_v48, 0.0 }
  0xcc   :  { %v360_v60 = vmul.f32 %v344_v54, %v198_v51 }
  0xcf   :  { %v165_v55 = vpop.f32.mrf.mxu0 }
  0xd0   :  { %v166_v61 = vadd.f32 %v2390_v11, %v165_v55 }
  0xd2   :  { %1800 = vmatmul.msk.f32.gmra.mxu1 %vm78_vm0, %v360_v60  ;;  %1808 = vmatmul.msk.f32.gmra.mxu3 %vm78_vm0, %v368_v52  ;;  %v199_v17 = vmax.f32 %v166_v61, 0.0 }
  0xd4   :  { %v361_v59 = vmul.f32 %v345_v14, %v199_v17 }
  0xd7   :  { %v168_v19 = vpop.f32.mrf.mxu0 }
  0xd8   :  { %v169_v20 = vadd.f32 %v2390_v11, %v168_v19 }
  0xda   :  { %1801 = vmatmul.msk.f32.gmra.mxu1 %vm78_vm0, %v361_v59  ;;  %1809 = vmatmul.msk.f32.gmra.mxu3 %vm78_vm0, %v369_v9  ;;  %v200_v33 = vmax.f32 %v169_v20, 0.0 }
  0xdc   :  { %v362_v21 = vmul.f32 %v346_v16, %v200_v33 }
  0xdf   :  { %v171_v63 = vpop.f32.mrf.mxu0 }
  0xe0   :  { %v172_v49 = vadd.f32 %v2390_v11, %v171_v63 }
  0xe2   :  { %1802 = vmatmul.msk.f32.gmra.mxu1 %vm78_vm0, %v362_v21  ;;  %v201_v22 = vmax.f32 %v172_v49, 0.0 }
  0xe4   :  { %v363_v34 = vmul.f32 %v347_v31, %v201_v22 }
  0xe7   :  { %v174_v32 = vpop.f32.mrf.mxu0 }
  0xe8   :  { %v175_v15 = vadd.f32 %v2390_v11, %v174_v32 }
  0xea   :  { %1803 = vmatmul.msk.f32.gmra.mxu1 %vm78_vm0, %v363_v34  ;;  %v202_v58 = vmax.f32 %v175_v15, 0.0 }
  0xec   :  { %v364_v3 = vmul.f32 %v348_v35, %v202_v58 }
  0xef   :  { %v177_v36 = vpop.f32.mrf.mxu0 }
  0xf0   :  { %v178_v25 = vadd.f32 %v2390_v11, %v177_v36 }
  0xf2   :  { %1804 = vmatmul.msk.f32.gmra.mxu1 %vm78_vm0, %v364_v3  ;;  %v203_v6 = vmax.f32 %v178_v25, 0.0 }
  0xf4   :  { %v365_v30 = vmul.f32 %v349_v1, %v203_v6 }
  0xfa   :  { %1805 = vmatmul.msk.f32.gmra.mxu1 %vm78_vm0, %v365_v30 }
 0x11f   :  { %v447_v24 = vpop.f32.mrf.mxu1 }
 0x120   :  { %v496_v5 = vsel %vm495_vm3, %v447_v24, -inf }
 0x121   :  { %497 = vmax.xlane.f32.xlu2 %v496_v5 }
 0x127   :  { %v450_v18 = vpop.f32.mrf.mxu1 }
 0x128   :  { %v499_v11 = vsel %vm495_vm3, %v450_v18, -inf }
 0x129   :  { %500 = vmax.xlane.f32.xlu0 %v499_v11 }
 0x12f   :  { %v2504_v45 = vpop.f32.mrf.mxu1 }
 0x130   :  { %v502_v41 = vsel %vm495_vm3, %v2504_v45, -inf }
 0x137   :  { %v2506_v13 = vpop.f32.mrf.mxu1 }
 0x138   :  { %v505_v44 = vsel %vm495_vm3, %v2506_v13, -inf }
 0x13f   :  { %v2508_v23 = vpop.f32.mrf.mxu1 }
 0x140   :  { %v508_v8 = vsel %vm495_vm3, %v2508_v23, -inf }
 0x145   :  { %v483_v4 = vpop.f32.mrf.mxu3 }
 0x146   :  { %v532_v37 = vsel %vm495_vm3, %v483_v4, -inf }
 0x147   :  { %533 = vmax.xlane.f32.xlu1 %v532_v37  ;;  %v2511_v38 = vpop.f32.mrf.mxu1 }
 0x148   :  { %v511_v29 = vsel %vm495_vm3, %v2511_v38, -inf }
 0x14d   :  { %v486_v39 = vpop.f32.mrf.mxu3 }
 0x14e   :  { %v535_v40 = vsel %vm495_vm3, %v486_v39, -inf }
 0x14f   :  { %536 = vmax.xlane.f32.xlu2 %v535_v40  ;;  %503 = vmax.xlane.f32.xlu1 %v502_v41  ;;  %v2516_v42 = vpop.f32.mrf.mxu1 }
 0x150   :  { %v514_v55 = vsel %vm495_vm3, %v2516_v42, -inf }
 0x155   :  { %v2518_v43 = vpop.f32.mrf.mxu3 }
 0x156   :  { %v538_v47 = vsel %vm495_vm3, %v2518_v43, -inf }
 0x157   :  { %506 = vmax.xlane.f32.xlu2 %v505_v44  ;;  %v2524_v48 = vpop.f32.mrf.mxu1  ;;  %539 = vmax.xlane.f32.xlu0 %v538_v47 }
 0x158   :  { %v517_v10 = vsel %vm495_vm3, %v2524_v48, -inf }
 0x15d   :  { %v2526_v50 = vpop.f32.mrf.mxu3 }
 0x15e   :  { %v541_v51 = vsel %vm495_vm3, %v2526_v50, -inf }
 0x15f   :  { %509 = vmax.xlane.f32.xlu2 %v508_v8  ;;  %v2534_v12 = vpop.f32.mrf.mxu1  ;;  %512 = vmax.xlane.f32.xlu0 %v511_v29 }
 0x160   :  { %542 = vmax.xlane.f32.xlu1 %v541_v51  ;;  %v520_v53 = vsel %vm495_vm3, %v2534_v12, -inf }
 0x167   :  { %518 = vmax.xlane.f32.xlu2 %v517_v10  ;;  %v2540_v54 = vpop.f32.mrf.mxu1  ;;  %521 = vmax.xlane.f32.xlu0 %v520_v53 }
 0x168   :  { %515 = vmax.xlane.f32.xlu1 %v514_v55  ;;  %v523_v52 = vsel %vm495_vm3, %v2540_v54, -inf }
 0x16f   :  { %v2544_v56 = vpop.f32.mrf.mxu1 }
 0x170   :  { %524 = vmax.xlane.f32.xlu1 %v523_v52  ;;  %v526_v60 = vsel %vm495_vm3, %v2544_v56, -inf }
 0x171   :  { %527 = vmax.xlane.f32.xlu2 %v526_v60 }
 0x177   :  { %v2550_v61 = vpop.f32.mrf.mxu1 }
 0x178   :  { %v529_v62 = vsel %vm495_vm3, %v2550_v61, -inf }
 0x179   :  { %530 = vmax.xlane.f32.xlu0 %v529_v62 }
 0x194   :  { %v498_v28 = vpop.xlane.xlu2 %497 }
 0x195   :  { %v544_v7 = vsub.f32 %v447_v24, %v498_v28 }
 0x197   :  { %v560_v17 = vmul.f32 1.442695, %v544_v7 }
 0x199   :  { %1915 = vpow2.f32 %v560_v17 }
 0x19c   :  { %v501_v0 = vpop.xlane.xlu0 %500 }
 0x19d   :  { %v545_v46 = vsub.f32 %v450_v18, %v501_v0 }
 0x19f   :  { %v2554_v14 = vpop.eup %1915  ;;  %v562_v19 = vmul.f32 1.442695, %v545_v46 }
 0x1a0   :  { %v592_v9 = vsel %vm495_vm3, %v2554_v14, 0.0 }
 0x1a1   :  { %1917 = vpow2.f32 %v562_v19  ;;  %593 = vadd.xlane.f32.xlu2 %v592_v9 }
 0x1a7   :  { %v2558_v59 = vpop.eup %1917 }
 0x1a8   :  { %v595_v20 = vsel %vm495_vm3, %v2558_v59, 0.0 }
 0x1a9   :  { %596 = vadd.xlane.f32.xlu0 %v595_v20 }
 0x1ba   :  { %v534_v33 = vpop.xlane.xlu1 %533 }
 0x1bb   :  { %v556_v26 = vsub.f32 %v483_v4, %v534_v33 }
 0x1bd   :  { %v584_v16 = vmul.f32 1.442695, %v556_v26 }
 0x1bf   :  { %1919 = vpow2.f32 %v584_v16 }
 0x1c2   :  { %v537_v63 = vpop.xlane.xlu2 %536  ;;  %v504_v21 = vpop.xlane.xlu1 %503 }
 0x1c3   :  { %v557_v49 = vsub.f32 %v486_v39, %v537_v63  ;;  %v546_v22 = vsub.f32 %v2504_v45, %v504_v21 }
 0x1c5   :  { %v2563_v27 = vpop.eup %1919  ;;  %v586_v31 = vmul.f32 1.442695, %v557_v49  ;;  %v564_v32 = vmul.f32 1.442695, %v546_v22 }
 0x1c6   :  { %v628_v34 = vsel %vm495_vm3, %v2563_v27, 0.0 }
 0x1c7   :  { %1921 = vpow2.f32 %v586_v31  ;;  %629 = vadd.xlane.f32.xlu2 %v628_v34  ;;  %v2040_v34 = vmov 2  }
 0x1c8   :  { %1923 = vpow2.f32 %v564_v32  ;;  %1874 = vset.pattern.permute.xlu2 %v2040_v34 }
 0x1ca   :  { %v507_v15 = vpop.xlane.xlu2 %506  ;;  %v540_v58 = vpop.xlane.xlu0 %539 }
 0x1cb   :  { %v547_v2 = vsub.f32 %v2506_v13, %v507_v15  ;;  %v558_v35 = vsub.f32 %v2518_v43, %v540_v58 }
 0x1cd   :  { %v2569_v36 = vpop.eup %1921  ;;  %v566_v3 = vmul.f32 1.442695, %v547_v2  ;;  %v588_v25 = vmul.f32 1.442695, %v558_v35 }
 0x1ce   :  { %v2571_v6 = vpop.eup %1923  ;;  %v631_v57 = vsel %vm495_vm3, %v2569_v36, 0.0 }
 0x1cf   :  { %1925 = vpow2.f32 %v566_v3  ;;  %v598_v1 = vsel %vm495_vm3, %v2571_v6, 0.0  ;;  %632 = vadd.xlane.f32.xlu0 %v631_v57  ;;  %v2041_v57 = vmov 1  }
 0x1d0   :  { %1927 = vpow2.f32 %v588_v25  ;;  %599 = vadd.xlane.f32.xlu1 %v598_v1 }
 0x1d2   :  { %v510_v30 = vpop.xlane.xlu2 %509  ;;  %v513_v24 = vpop.xlane.xlu0 %512 }
 0x1d3   :  { %v548_v5 = vsub.f32 %v2508_v23, %v510_v30  ;;  %v543_v18 = vpop.xlane.xlu1 %542  ;;  %v549_v11 = vsub.f32 %v2511_v38, %v513_v24 }
 0x1d4   :  { %v559_v45 = vsub.f32 %v2526_v50, %v543_v18 }
 0x1d5   :  { %v2580_v13 = vpop.eup %1925  ;;  %v568_v4 = vmul.f32 1.442695, %v548_v5  ;;  %v570_v37 = vmul.f32 1.442695, %v549_v11 }
 0x1d6   :  { %v2582_v39 = vpop.eup %1927  ;;  %v590_v40 = vmul.f32 1.442695, %v559_v45  ;;  %v601_v41 = vsel %vm495_vm3, %v2580_v13, 0.0 }
 0x1d7   :  { %1929 = vpow2.f32 %v568_v4  ;;  %602 = vadd.xlane.f32.xlu2 %v601_v41  ;;  %v634_v23 = vsel %vm495_vm3, %v2582_v39, 0.0 }
 0x1d8   :  { %1931 = vpow2.f32 %v590_v40  ;;  %635 = vadd.xlane.f32.xlu1 %v634_v23 }
 0x1d9   :  { %1933 = vpow2.f32 %v570_v37 }
 0x1da   :  { %v519_v38 = vpop.xlane.xlu2 %518  ;;  %v522_v43 = vpop.xlane.xlu0 %521 }
 0x1db   :  { %v551_v44 = vsub.f32 %v2524_v48, %v519_v38  ;;  %v516_v47 = vpop.xlane.xlu1 %515  ;;  %v552_v50 = vsub.f32 %v2534_v12, %v522_v43 }
 0x1dc   :  { %v550_v8 = vsub.f32 %v2516_v42, %v516_v47 }
 0x1dd   :  { %v2591_v29 = vpop.eup %1929  ;;  %v574_v51 = vmul.f32 1.442695, %v551_v44  ;;  %v576_v10 = vmul.f32 1.442695, %v552_v50 }
 0x1de   :  { %v2593_v53 = vpop.eup %1931  ;;  %v572_v55 = vmul.f32 1.442695, %v550_v8  ;;  %v604_v52 = vsel %vm495_vm3, %v2591_v29, 0.0 }
 0x1df   :  { %v2597_v60 = vpop.eup %1933  ;;  %1935 = vpow2.f32 %v574_v51  ;;  %v637_v48 = vsel %vm495_vm3, %v2593_v53, 0.0  ;;  %605 = vadd.xlane.f32.xlu0 %v604_v52 }
 0x1e0   :  { %1937 = vpow2.f32 %v572_v55  ;;  %638 = vadd.xlane.f32.xlu2 %v637_v48  ;;  %v607_v42 = vsel %vm495_vm3, %v2597_v60, 0.0 }
 0x1e1   :  { %1939 = vpow2.f32 %v576_v10  ;;  %608 = vadd.xlane.f32.xlu1 %v607_v42 }
 0x1e3   :  { %v525_v12 = vpop.xlane.xlu1 %524 }
 0x1e4   :  { %v553_v62 = vsub.f32 %v2540_v54, %v525_v12  ;;  %v528_v28 = vpop.xlane.xlu2 %527 }
 0x1e5   :  { %v2604_v7 = vpop.eup %1935  ;;  %v554_v17 = vsub.f32 %v2544_v56, %v528_v28 }
 0x1e6   :  { %v2607_v0 = vpop.eup %1937  ;;  %v578_v46 = vmul.f32 1.442695, %v553_v62  ;;  %v613_v19 = vsel %vm495_vm3, %v2604_v7, 0.0 }
 0x1e7   :  { %v2611_v9 = vpop.eup %1939  ;;  %v580_v20 = vmul.f32 1.442695, %v554_v17  ;;  %v610_v33 = vsel %vm495_vm3, %v2607_v0, 0.0  ;;  %614 = vadd.xlane.f32.xlu0 %v613_v19 }
 0x1e8   :  { %1941 = vpow2.f32 %v578_v46  ;;  %611 = vadd.xlane.f32.xlu2 %v610_v33  ;;  %v616_v54 = vsel %vm495_vm3, %v2611_v9, 0.0 }
 0x1e9   :  { %1943 = vpow2.f32 %v580_v20  ;;  %617 = vadd.xlane.f32.xlu1 %v616_v54 }
 0x1ec   :  { %v531_v56 = vpop.xlane.xlu0 %530 }
 0x1ed   :  { %v555_v26 = vsub.f32 %v2550_v61, %v531_v56  ;;  %v2039_v61 = vmov 0  }
 0x1ee   :  { %v2618_v16 = vpop.eup %1941  ;;  %1869 = vset.pattern.permute.xlu0 %v2039_v61  ;;  %1872 = vset.pattern.permute.xlu1 %v2039_v61 }
 0x1ef   :  { %v2620_v63 = vpop.eup %1943  ;;  %v582_v21 = vmul.f32 1.442695, %v555_v26  ;;  %v619_v49 = vsel %vm495_vm3, %v2618_v16, 0.0 }
 0x1f0   :  { %620 = vadd.xlane.f32.xlu2 %v619_v49  ;;  %v622_v22 = vsel %vm495_vm3, %v2620_v63, 0.0 }
 0x1f1   :  { %1945 = vpow2.f32 %v582_v21  ;;  %623 = vadd.xlane.f32.xlu0 %v622_v22 }
 0x1f7   :  { %v2626_v31 = vpop.eup %1945 }
 0x1f8   :  { %v625_v32 = vsel %vm495_vm3, %v2626_v31, 0.0 }
 0x1f9   :  { %626 = vadd.xlane.f32.xlu1 %v625_v32  ;;  %v2708_v32 = vld [vmem:[%s3497_s1] sm:$0xff] }
 0x214   :  { %v594_v15 = vpop.xlane.xlu2 %593 }
 0x215   :  { %1947 = vrcp.f32 %v594_v15 }
 0x21b   :  { %v1948_v58 = vpop.eup %1947 }
 0x21c   :  { %v597_v2 = vpop.xlane.xlu0 %596  ;;  %v656_v35 = vmul.f32 %v1948_v58, %v2554_v14 }
 0x21d   :  { %1949 = vrcp.f32 %v597_v2 }
 0x21e   :  { %674 = vperm.xlu0 %1869, %v656_v35  }
 0x223   :  { %v1950_v3 = vpop.eup %1949 }
 0x224   :  { %v657_v25 = vmul.f32 %v1950_v3, %v2558_v59 }
 0x226   :  { %1870 = vset.pattern.permute.xlu0 %v2041_v57  ;;  %933 = vperm.xlu2 %1874, %v657_v25  }
 0x227   :  { %679 = vperm.xlu1 %1872, %v657_v25   ;;  %769 = vperm.xlu0 %1870, %v656_v35  }
 0x22e   :  { %1875 = vset.pattern.permute.xlu2 %v2039_v61 }
 0x22f   :  { %1873 = vset.pattern.permute.xlu1 %v2041_v57  ;;  %1871 = vset.pattern.permute.xlu0 %v2040_v34 }
 0x230   :  { %773 = vperm.xlu1 %1873, %v657_v25   ;;  %929 = vperm.xlu0 %1871, %v656_v35  }
 0x238   :  { %1880 = vset.pattern.permute.xlu0 %v2039_v61 }
 0x23a   :  { %v630_v14 = vpop.xlane.xlu2 %629 }
 0x23b   :  { %1951 = vrcp.f32 %v630_v14  ;;  %v2722_v14 = vld [vmem:[%s3497_s1 + $0x60] sm:$0xff] }
 0x241   :  { %v1952_v1 = vpop.eup %1951 }
 0x242   :  { %v633_v59 = vpop.xlane.xlu0 %632  ;;  %v668_v30 = vmul.f32 %v1952_v1, %v2563_v27 }
 0x243   :  { %v600_v24 = vpop.xlane.xlu1 %599  ;;  %1953 = vrcp.f32 %v633_v59 }
 0x244   :  { %1955 = vrcp.f32 %v600_v24  ;;  %734 = vperm.xlu2 %1875, %v668_v30   ;;  %817 = vperm.xlu1 %1873, %v668_v30  }
 0x249   :  { %v1954_v5 = vpop.eup %1953 }
 0x24a   :  { %v1956_v18 = vpop.eup %1955  ;;  %v603_v11 = vpop.xlane.xlu2 %602  ;;  %v669_v45 = vmul.f32 %v1954_v5, %v2569_v36 }
 0x24b   :  { %v658_v4 = vmul.f32 %v1956_v18, %v2571_v6  ;;  %1957 = vrcp.f32 %v603_v11  ;;  %v636_v36 = vpop.xlane.xlu1 %635 }
 0x24c   :  { %1876 = vset.pattern.permute.xlu2 %v2040_v34  ;;  %1879 = vset.pattern.permute.xlu1 %v2040_v34  ;;  %1959 = vrcp.f32 %v636_v36 }
 0x24d   :  { %739 = vperm.xlu0 %1880, %v669_v45   ;;  %977 = vperm.xlu2 %1876, %v668_v30  }
 0x24e   :  { %937 = vperm.xlu1 %1879, %v658_v4  }
 0x251   :  { %v1958_v27 = vpop.eup %1957 }
 0x252   :  { %v659_v37 = vmul.f32 %v1958_v27, %v2580_v13  ;;  %v1960_v40 = vpop.eup %1959  ;;  %v606_v23 = vpop.xlane.xlu0 %605 }
 0x253   :  { %v639_v41 = vpop.xlane.xlu2 %638  ;;  %v670_v13 = vmul.f32 %v1960_v40, %v2582_v39 }
 0x254   :  { %v609_v6 = vpop.xlane.xlu1 %608 }
 0x255   :  { %1881 = vset.pattern.permute.xlu0 %v2040_v34  ;;  %1877 = vset.pattern.permute.xlu2 %v2039_v61  ;;  %1961 = vrcp.f32 %v609_v6 }
 0x256   :  { %1882 = vset.pattern.permute.xlu1 %v2039_v61  ;;  %981 = vperm.xlu0 %1881, %v669_v45   ;;  %1963 = vrcp.f32 %v639_v41 }
 0x257   :  { %684 = vperm.xlu2 %1877, %v658_v4   ;;  %689 = vperm.xlu1 %1882, %v659_v37   ;;  %1965 = vrcp.f32 %v606_v23 }
 0x25a   :  { %v615_v39 = vpop.xlane.xlu0 %614 }
 0x25b   :  { %v1962_v38 = vpop.eup %1961  ;;  %v612_v8 = vpop.xlane.xlu2 %611  ;;  %1967 = vrcp.f32 %v615_v39 }
 0x25c   :  { %v1964_v43 = vpop.eup %1963  ;;  %v661_v44 = vmul.f32 %v1962_v38, %v2597_v60  ;;  %1969 = vrcp.f32 %v612_v8  ;;  %v2763_v38 = vld [vmem:[%s3497_s1 + $0x18] sm:$0xff] }
 0x25d   :  { %v671_v47 = vmul.f32 %v1964_v43, %v2593_v53  ;;  %v1966_v50 = vpop.eup %1965  ;;  %v618_v53 = vpop.xlane.xlu1 %617 }
 0x25e   :  { %941 = vperm.xlu0 %1881, %v659_v37   ;;  %v660_v51 = vmul.f32 %v1966_v50, %v2591_v29  ;;  %1971 = vrcp.f32 %v618_v53  ;;  %v2776_v50 = vld [vmem:[%s3497_s1 + $0x28] sm:$0xff] }
 0x25f   :  { %1878 = vset.pattern.permute.xlu2 %v2041_v57  ;;  %1883 = vset.pattern.permute.xlu1 %v2041_v57 }
 0x260   :  { %777 = vperm.xlu2 %1878, %v658_v4   ;;  %781 = vperm.xlu1 %1883, %v659_v37  }
 0x261   :  { %v1968_v10 = vpop.eup %1967 }
 0x262   :  { %v1970_v55 = vpop.eup %1969  ;;  %v2663_v52 = vmul.f32 %v1968_v10, %v2604_v7 }
 0x263   :  { %v662_v29 = vmul.f32 %v1970_v55, %v2607_v0  ;;  %v621_v42 = vpop.xlane.xlu2 %620 }
 0x264   :  { %v1972_v60 = vpop.eup %1971  ;;  %v624_v12 = vpop.xlane.xlu0 %623 }
 0x265   :  { %v664_v48 = vmul.f32 %v1972_v60, %v2611_v9  ;;  %1973 = vrcp.f32 %v624_v12  ;;  %v2800_v12 = vld [vmem:[%s3497_s1 + $0x30] sm:$0xff] }
 0x266   :  { %1885 = vset.pattern.permute.xlu0 %v2041_v57  ;;  %1975 = vrcp.f32 %v621_v42 }
 0x267   :  { %825 = vperm.xlu0 %1885, %v670_v13  }
 0x268   :  { %1884 = vset.pattern.permute.xlu1 %v2039_v61  ;;  %821 = vperm.xlu2 %1878, %v669_v45   ;;  %v2739_v45 = vld [vmem:[%s3497_s1 + $0x68] sm:$0xff] }
 0x269   :  { %744 = vperm.xlu1 %1884, %v670_v13  }
 0x26b   :  { %v1974_v28 = vpop.eup %1973 }
 0x26c   :  { %v627_v7 = vpop.xlane.xlu1 %626  ;;  %v1976_v17 = vpop.eup %1975  ;;  %v666_v0 = vmul.f32 %v1974_v28, %v2620_v63 }
 0x26d   :  { %1977 = vrcp.f32 %v627_v7  ;;  %v665_v46 = vmul.f32 %v1976_v17, %v2618_v16  ;;  %v2696_v16 = vld [vmem:[%s3497_s1 + $0x8] sm:$0xff]  ;;  %v2809_v17 = vld [vmem:[%s3497_s1 + $0x38] sm:$0xff] }
 0x26f   :  { %789 = vperm.xlu0 %1885, %v661_v44  }
 0x270   :  { %1886 = vset.pattern.permute.xlu2 %v2040_v34 }
 0x271   :  { %1891 = vset.pattern.permute.xlu1 %v2041_v57  ;;  %985 = vperm.xlu2 %1886, %v670_v13  }
 0x272   :  { %829 = vperm.xlu1 %1891, %v671_v47  }
 0x273   :  { %v1978_v9 = vpop.eup %1977 }
 0x274   :  { %v667_v33 = vmul.f32 %v1978_v9, %v2626_v31 }
 0x277   :  { %1894 = vset.pattern.permute.xlu0 %v2040_v34 }
 0x278   :  { %949 = vperm.xlu0 %1894, %v661_v44  }
 0x279   :  { %1887 = vset.pattern.permute.xlu2 %v2039_v61 }
 0x27a   :  { %1893 = vset.pattern.permute.xlu1 %v2039_v61  ;;  %694 = vperm.xlu2 %1887, %v660_v51  }
 0x27b   :  { %699 = vperm.xlu1 %1893, %v661_v44   ;;  %v2770_v44 = vld [vmem:[%s3497_s1 + $0x10] sm:$0xff] }
 0x280   :  { %1898 = vset.pattern.permute.xlu0 %v2039_v61  ;;  %v934_v62 = vpop.permute.xlu2 %933 }
 0x281   :  { %709 = vperm.xlu0 %1898, %v2663_v52   ;;  %v993_v63 = vmul.f32 %v2696_v16, %v934_v62 }
 0x282   :  { %1888 = vset.pattern.permute.xlu2 %v2041_v57 }
 0x283   :  { %1896 = vset.pattern.permute.xlu1 %v2041_v57  ;;  %785 = vperm.xlu2 %1888, %v660_v51  }
 0x284   :  { %793 = vperm.xlu1 %1896, %v662_v29  }
 0x289   :  { %1902 = vset.pattern.permute.xlu0 %v2041_v57 }
 0x28a   :  { %801 = vperm.xlu0 %1902, %v664_v48  }
 0x28b   :  { %1889 = vset.pattern.permute.xlu2 %v2040_v34 }
 0x28c   :  { %1900 = vset.pattern.permute.xlu1 %v2040_v34  ;;  %945 = vperm.xlu2 %1889, %v660_v51  }
 0x28d   :  { %957 = vperm.xlu1 %1900, %v2663_v52  }
 0x290   :  { %v2685_v20 = vpop.permute.xlu0 %674 }
 0x292   :  { %1903 = vset.pattern.permute.xlu0 %v2040_v34 }
 0x293   :  { %961 = vperm.xlu0 %1903, %v664_v48  }
 0x294   :  { %1890 = vset.pattern.permute.xlu2 %v2039_v61 }
 0x295   :  { %749 = vperm.xlu2 %1890, %v671_v47   ;;  %1901 = vset.pattern.permute.xlu1 %v2039_v61 }
 0x296   :  { %714 = vperm.xlu1 %1901, %v664_v48  }
 0x299   :  { %v2688_v54 = vpop.permute.xlu1 %679  ;;  %v770_v26 = vpop.permute.xlu0 %769 }
 0x29a   :  { %v832_v41 = vmul.f32 %v2708_v32, %v770_v26 }
 0x29b   :  { %1907 = vset.pattern.permute.xlu0 %v2039_v61 }
 0x29c   :  { %724 = vperm.xlu0 %1907, %v666_v0  }
 0x29d   :  { %1892 = vset.pattern.permute.xlu2 %v2040_v34 }
 0x29e   :  { %989 = vperm.xlu2 %1892, %v671_v47   ;;  %1905 = vset.pattern.permute.xlu1 %v2041_v57  ;;  %v2683_v19 = vpop.permute.xlu2 %734 }
 0x29f   :  { %805 = vperm.xlu1 %1905, %v665_v46  }
 0x2a2   :  { %v774_v21 = vpop.permute.xlu1 %773  ;;  %v930_v22 = vpop.permute.xlu0 %929 }
 0x2a3   :  { %v992_v15 = vmul.f32 %v2708_v32, %v930_v22  ;;  %v833_v2 = vmul.f32 %v2696_v16, %v774_v21 }
 0x2a4   :  { %1911 = vset.pattern.permute.xlu0 %v2041_v57 }
 0x2a5   :  { %813 = vperm.xlu0 %1911, %v667_v33  }
 0x2a6   :  { %1895 = vset.pattern.permute.xlu2 %v2039_v61 }
 0x2a7   :  { %704 = vperm.xlu2 %1895, %v662_v29   ;;  %1906 = vset.pattern.permute.xlu1 %v2040_v34  ;;  %v978_v56 = vpop.permute.xlu2 %977 }
 0x2a8   :  { %965 = vperm.xlu1 %1906, %v665_v46   ;;  %v1004_v24 = vmul.f32 %v2722_v14, %v978_v56 }
 0x2ad   :  { %1026 = vrot.lane.b32.xlu0 %v993_v63, %s2038_s9 }
 0x2ae   :  { %1912 = vset.pattern.permute.xlu0 %v2040_v34 }
 0x2af   :  { %1897 = vset.pattern.permute.xlu2 %v2040_v34 }
 0x2b0   :  { %953 = vperm.xlu2 %1897, %v662_v29   ;;  %1910 = vset.pattern.permute.xlu1 %v2039_v61 }
 0x2b1   :  { %v2703_v49 = vpop.permute.xlu2 %684  ;;  %729 = vperm.xlu1 %1910, %v667_v33  }
 0x2b6   :  { %v818_v31 = vpop.permute.xlu1 %817 }
 0x2b7   :  { %v844_v1 = vmul.f32 %v2722_v14, %v818_v31  ;;  %v2827_v31 = vld [vmem:[%s3497_s1 + $0x48] sm:$0xff] }
 0x2b8   :  { %1899 = vset.pattern.permute.xlu2 %v2041_v57 }
 0x2b9   :  { %797 = vperm.xlu2 %1899, %v2663_v52   ;;  %1024 = vrot.lane.b32.xlu1 %v992_v15, %s2038_s9 }
 0x2ba   :  { %v778_v58 = vpop.permute.xlu2 %777 }
 0x2bb   :  { %v834_v47 = vmul.f32 %v2770_v44, %v778_v58 }
 0x2bf   :  { %v2715_v35 = vpop.permute.xlu0 %739 }
 0x2c0   :  { %v938_v3 = vpop.permute.xlu1 %937 }
 0x2c1   :  { %1904 = vset.pattern.permute.xlu2 %v2039_v61  ;;  %866 = vrot.lane.b32.xlu1 %v833_v2, %s2042_s16  ;;  %v994_v55 = vmul.f32 %v2770_v44, %v938_v3 }
 0x2c2   :  { %v822_v25 = vpop.permute.xlu2 %821  ;;  %719 = vperm.xlu2 %1904, %v665_v46  }
 0x2c8   :  { %v982_v59 = vpop.permute.xlu0 %981 }
 0x2c9   :  { %v2725_v30 = vpop.permute.xlu1 %689  ;;  %888 = vrot.lane.b32.xlu1 %v844_v1, %s2042_s16  ;;  %v1005_v6 = vmul.f32 %v2739_v45, %v982_v59 }
 0x2ca   :  { %1908 = vset.pattern.permute.xlu2 %v2041_v57  ;;  %v845_v57 = vmul.f32 %v2739_v45, %v822_v25 }
 0x2cb   :  { %v2729_v61 = vpop.permute.xlu2 %985  ;;  %809 = vperm.xlu2 %1908, %v666_v0  }
 0x2d0   :  { %v942_v5 = vpop.permute.xlu0 %941 }
 0x2d1   :  { %1048 = vrot.lane.b32.xlu1 %v1004_v24, %s2038_s9  ;;  %v995_v10 = vmul.f32 %v2763_v38, %v942_v5 }
 0x2d2   :  { %v782_v18 = vpop.permute.xlu1 %781 }
 0x2d3   :  { %1909 = vset.pattern.permute.xlu2 %v2040_v34  ;;  %v2750_v34 = vld [vmem:[%s3497_s1 + $0x20] sm:$0xff]  ;;  %v835_v43 = vmul.f32 %v2763_v38, %v782_v18 }
 0x2d4   :  { %v2734_v11 = vpop.permute.xlu2 %694  ;;  %969 = vperm.xlu2 %1909, %v666_v0  }
 0x2d9   :  { %890 = vrot.lane.b32.xlu1 %v845_v57, %s2042_s16  ;;  %v2743_v4 = vpop.permute.xlu0 %825  ;;  %v2846_v57 = vld [vmem:[%s3497_s1 + $0x50] sm:$0xff] }
 0x2db   :  { %v2745_v27 = vpop.permute.xlu1 %744 }
 0x2dc   :  { %973 = vperm.xlu2 %1909, %v667_v33   ;;  %v2818_v33 = vld [vmem:[%s3497_s1 + $0x40] sm:$0xff] }
 0x2dd   :  { %v786_v37 = vpop.permute.xlu2 %785 }
 0x2de   :  { %v836_v36 = vmul.f32 %v2750_v34, %v786_v37 }
 0x2e0   :  { %872 = vrot.lane.b32.xlu0 %v836_v36, %s2042_s16 }
 0x2e1   :  { %1050 = vrot.lane.b32.xlu1 %v1005_v6, %s2038_s9  ;;  %v790_v40 = vpop.permute.xlu0 %789 }
 0x2e2   :  { %v837_v29 = vmul.f32 %v2776_v50, %v790_v40  ;;  %v2853_v40 = vld [vmem:[%s3497_s1 + $0x58] sm:$0xff] }
 0x2e4   :  { %v2757_v13 = vpop.permute.xlu1 %829  ;;  %864 = vrot.lane.b32.xlu2 %v832_v41, %s2042_s16 }
 0x2e6   :  { %v946_v23 = vpop.permute.xlu2 %945 }
 0x2e7   :  { %v996_v48 = vmul.f32 %v2750_v34, %v946_v23 }
 0x2e9   :  { %870 = vrot.lane.b32.xlu1 %v835_v43, %s2042_s16 }
 0x2ea   :  { %v950_v39 = vpop.permute.xlu0 %949 }
 0x2eb   :  { %v997_v8 = vmul.f32 %v2776_v50, %v950_v39 }
 0x2ec   :  { %868 = vrot.lane.b32.xlu2 %v834_v47, %s2042_s16 }
 0x2ed   :  { %v2780_v51 = vpop.permute.xlu1 %699  ;;  %1034 = vrot.lane.b32.xlu0 %v997_v8, %s2038_s9 }
 0x2ef   :  { %v2784_v53 = vpop.permute.xlu2 %749 }
 0x2f1   :  { %1030 = vrot.lane.b32.xlu1 %v995_v10, %s2038_s9  ;;  %v752_v10 = vmul.f32 %v2708_v32, %v2685_v20 }
 0x2f3   :  { %v2794_v42 = vpop.permute.xlu0 %709 }
 0x2f4   :  { %1028 = vrot.lane.b32.xlu2 %v994_v55, %s2038_s9 }
 0x2f6   :  { %v794_v52 = vpop.permute.xlu1 %793 }
 0x2f7   :  { %v838_v62 = vmul.f32 %v2800_v12, %v794_v52 }
 0x2f8   :  { %v2790_v60 = vpop.permute.xlu2 %989 }
 0x2f9   :  { %874 = vrot.lane.b32.xlu1 %v837_v29, %s2042_s16  ;;  %v753_v29 = vmul.f32 %v2696_v16, %v2688_v54  ;;  %v765_v54 = vmul.f32 %v2739_v45, %v2715_v35  ;;  %v754_v16 = vmul.f32 %v2770_v44, %v2703_v49  ;;  %v2890_v49 = vld [vmem:[%s3496_s0 + $0x10] sm:$0xff] }
 0x2fc   :  { %1032 = vrot.lane.b32.xlu2 %v996_v48, %s2038_s9  ;;  %v802_v46 = vpop.permute.xlu0 %801 }
 0x2fd   :  { %v840_v56 = vmul.f32 %v2818_v33, %v802_v46 }
 0x2ff   :  { %v958_v28 = vpop.permute.xlu1 %957 }
 0x300   :  { %v999_v0 = vmul.f32 %v2809_v17, %v958_v28 }
 0x301   :  { %v2803_v7 = vpop.permute.xlu2 %704  ;;  %876 = vrot.lane.b32.xlu1 %v838_v62, %s2042_s16 }
 0x304   :  { %1038 = vrot.lane.b32.xlu2 %v999_v0, %s2038_s9  ;;  %v2869_v0 = vld [vmem:[%s3496_s0] sm:$0xff] }
 0x305   :  { %v962_v21 = vpop.permute.xlu0 %961 }
 0x306   :  { %v1000_v58 = vmul.f32 %v2818_v33, %v962_v21 }
 0x308   :  { %v2813_v9 = vpop.permute.xlu1 %714 }
 0x30a   :  { %v954_v26 = vpop.permute.xlu2 %953 }
 0x30b   :  { %v998_v63 = vmul.f32 %v2800_v12, %v954_v26 }
 0x30c   :  { %880 = vrot.lane.b32.xlu2 %v840_v56, %s2042_s16 }
 0x30d   :  { %1036 = vrot.lane.b32.xlu0 %v998_v63, %s2038_s9  ;;  %v2881_v63 = vld [vmem:[%s3496_s0 + $0x8] sm:$0xff] }
 0x30e   :  { %v2839_v24 = vpop.permute.xlu0 %724 }
 0x311   :  { %v806_v22 = vpop.permute.xlu1 %805 }
 0x312   :  { %v841_v15 = vmul.f32 %v2827_v31, %v806_v22 }
 0x313   :  { %v798_v2 = vpop.permute.xlu2 %797 }
 0x314   :  { %v839_v3 = vmul.f32 %v2809_v17, %v798_v2  ;;  %882 = vrot.lane.b32.xlu2 %v841_v15, %s2042_s16  ;;  %v2900_v2 = vld [vmem:[%s3497_s1 + $0x70] sm:$0xff] }
 0x315   :  { %1040 = vrot.lane.b32.xlu0 %v1000_v58, %s2038_s9 }
 0x316   :  { %878 = vrot.lane.b32.xlu1 %v839_v3, %s2042_s16  ;;  %v846_v3 = vmul.f32 %v2900_v2, %v2743_v4  ;;  %v756_v4 = vmul.f32 %v2750_v34, %v2734_v11 }
 0x317   :  { %v814_v36 = vpop.permute.xlu0 %813 }
 0x318   :  { %v843_v41 = vmul.f32 %v2853_v40, %v814_v36 }
 0x31a   :  { %v966_v25 = vpop.permute.xlu1 %965 }
 0x31b   :  { %v1001_v1 = vmul.f32 %v2827_v31, %v966_v25 }
 0x31c   :  { %v2836_v59 = vpop.permute.xlu2 %719 }
 0x31d   :  { %1042 = vrot.lane.b32.xlu0 %v1001_v1, %s2038_s9 }
 0x31f   :  { %v1027_v20 = vpop.permute.xlu0 %1026 }
 0x323   :  { %v2841_v5 = vpop.permute.xlu1 %729 }
 0x325   :  { %v810_v18 = vpop.permute.xlu2 %809 }
 0x326   :  { %v842_v37 = vmul.f32 %v2846_v57, %v810_v18  ;;  %v755_v18 = vmul.f32 %v2763_v38, %v2725_v30  ;;  %v2925_v38 = vld [vmem:[%s3497_s1 + $0x78] sm:$0xff] }
 0x327   :  { %v847_v11 = vmul.f32 %v2925_v38, %v2757_v13  ;;  %v764_v13 = vmul.f32 %v2722_v14, %v2683_v19  ;;  %v2959_v14 = vld [vmem:[%s3496_s0 + $0x60] sm:$0xff] }
 0x328   :  { %884 = vrot.lane.b32.xlu2 %v842_v37, %s2042_s16  ;;  %v1006_v37 = vmul.f32 %v2900_v2, %v2729_v61 }
 0x32b   :  { %v1025_v6 = vpop.permute.xlu1 %1024 }
 0x32e   :  { %v970_v23 = vpop.permute.xlu2 %969 }
 0x32f   :  { %v1002_v43 = vmul.f32 %v2846_v57, %v970_v23 }
 0x330   :  { %886 = vrot.lane.b32.xlu2 %v843_v41, %s2042_s16 }
 0x331   :  { %1044 = vrot.lane.b32.xlu0 %v1002_v43, %s2038_s9  ;;  %v2917_v43 = vld [vmem:[%s3496_s0 + $0x18] sm:$0xff] }
 0x333   :  { %v867_v47 = vpop.permute.xlu1 %866 }
 0x334   :  { %v913_v62 = vadd.f32 %v867_v47, %v753_v29 }
 0x336   :  { %v974_v39 = vpop.permute.xlu2 %973  ;;  %v1073_v56 = vadd.f32 %v1027_v20, %v913_v62  ;;  %v2952_v20 = vld [vmem:[%s3496_s0 + $0x28] sm:$0xff] }
 0x337   :  { %v1003_v25 = vmul.f32 %v2853_v40, %v974_v39 }
 0x338   :  { %v1089_v21 = vmul.f32 %v2881_v63, %v1073_v56 }
 0x33b   :  { %v2859_v8 = vpop.permute.xlu1 %888 }
 0x33e   :  { %v865_v55 = vpop.permute.xlu2 %864 }
 0x33f   :  { %v912_v52 = vadd.f32 %v865_v55, %v752_v10  ;;  %v757_v10 = vmul.f32 %v2776_v50, %v2780_v51  ;;  %v2935_v55 = vld [vmem:[%s3496_s0 + $0x20] sm:$0xff]  ;;  %v924_v51 = vadd.f32 %v2859_v8, %v764_v13 }
 0x341   :  { %v1072_v48 = vadd.f32 %v1025_v6, %v912_v52 }
 0x343   :  { %v1049_v28 = vpop.permute.xlu1 %1048  ;;  %1120 = vrot.lane.b32.xlu1 %v1072_v48, %s2037_s15  ;;  %v1088_v46 = vmul.f32 %v2869_v0, %v1072_v48  ;;  %v1007_v48 = vmul.f32 %v2925_v38, %v2790_v60 }
 0x345   :  { %1184 = vrot.lane.b32.xlu0 %v1088_v46, %s2038_s9  ;;  %v2946_v46 = vadd.f32 %v1049_v28, %v924_v51 }
 0x346   :  { %v869_v32 = vpop.permute.xlu2 %868 }
 0x347   :  { %v914_v15 = vadd.f32 %v869_v32, %v754_v16  ;;  %v1100_v60 = vmul.f32 %v2959_v14, %v2946_v46  ;;  %v758_v32 = vmul.f32 %v2800_v12, %v2803_v7  ;;  %v1275_v16 = vld [vmem:[%s3502_s6 + $0x58] sm:$0xff]  ;;  %v760_v12 = vmul.f32 %v2818_v33, %v2813_v9  ;;  %v1274_v7 = vld [vmem:[%s3502_s6 + $0x50] sm:$0xff]  ;;  %v1272_v9 = vld [vmem:[%s3502_s6 + $0x40] sm:$0xff] }
 0x348   :  { %1332 = vmatpush.msra.mxu2 %v1275_v16  ;;  %1850 = vmatpush.msra.mxu3 %v1275_v16 }
 0x34a   :  { %1333 = vmatpush.msra.mxu2 %v1274_v7  ;;  %1851 = vmatpush.msra.mxu3 %v1274_v7 }
 0x34b   :  { %v891_v26 = vpop.permute.xlu1 %890  ;;  %1122 = vrot.lane.b32.xlu1 %v1073_v56, %s2037_s15 }
 0x34c   :  { %v2884_v22 = vadd.f32 %v891_v26, %v765_v54 }
 0x34d   :  { %1186 = vrot.lane.b32.xlu0 %v1089_v21, %s2038_s9  ;;  %v2972_v21 = vld [vmem:[%s3496_s0 + $0x30] sm:$0xff] }
 0x34e   :  { %v1029_v58 = vpop.permute.xlu2 %1028 }
 0x34f   :  { %v1074_v35 = vadd.f32 %v1029_v58, %v914_v15 }
 0x351   :  { %v1090_v45 = vmul.f32 %v2890_v49, %v1074_v35 }
 0x352   :  { %v873_v23 = vpop.permute.xlu0 %872 }
 0x353   :  { %v2893_v44 = vpop.permute.xlu1 %1050  ;;  %1188 = vrot.lane.b32.xlu1 %v1090_v45, %s2038_s9  ;;  %v916_v61 = vadd.f32 %v873_v23, %v756_v4  ;;  %v1273_v45 = vld [vmem:[%s3502_s6 + $0x48] sm:$0xff]  ;;  %v1268_v23 = vld [vmem:[%s3502_s6 + $0x20] sm:$0xff] }
 0x354   :  { %1334 = vmatpush.msra.mxu2 %v1273_v45  ;;  %1852 = vmatpush.msra.mxu3 %v1273_v45  ;;  %v1085_v4 = vadd.f32 %v2893_v44, %v2884_v22  ;;  %v763_v45 = vmul.f32 %v2853_v40, %v2841_v5 }
 0x355   :  { %1124 = vrot.lane.b32.xlu0 %v1074_v35, %s2037_s15 }
 0x356   :  { %v1033_v30 = vpop.permute.xlu2 %1032  ;;  %1335 = vmatpush.msra.mxu2 %v1272_v9  ;;  %1853 = vmatpush.msra.mxu3 %v1272_v9 }
 0x357   :  { %v1076_v34 = vadd.f32 %v1033_v30, %v916_v61  ;;  %v1266_v30 = vld [vmem:[%s3502_s6 + $0x10] sm:$0xff]  ;;  %v3023_v61 = vld [vmem:[%s3496_s0 + $0x40] sm:$0xff] }
 0x359   :  { %v1092_v52 = vmul.f32 %v2935_v55, %v1076_v34 }
 0x35b   :  { %v871_v1 = vpop.permute.xlu1 %870  ;;  %892 = vrot.lane.b32.xlu1 %v846_v3, %s2042_s16  ;;  %v759_v3 = vmul.f32 %v2809_v17, %v2794_v42  ;;  %v1270_v42 = vld [vmem:[%s3502_s6 + $0x30] sm:$0xff] }
 0x35c   :  { %v915_v36 = vadd.f32 %v871_v1, %v755_v18  ;;  %v1271_v18 = vld [vmem:[%s3502_s6 + $0x38] sm:$0xff] }
 0x35d   :  { %1046 = vrot.lane.b32.xlu0 %v1003_v25, %s2038_s9  ;;  %1336 = vmatpush.msra.mxu2 %v1271_v18 }
 0x35e   :  { %v1039_v8 = vpop.permute.xlu2 %1038  ;;  %1854 = vmatpush.msra.mxu3 %v1271_v18  ;;  %v766_v18 = vmul.f32 %v2900_v2, %v2745_v27 }
 0x35f   :  { %v1035_v62 = vpop.permute.xlu0 %1034  ;;  %1337 = vmatpush.msra.mxu2 %v1270_v42 }
 0x360   :  { %1855 = vmatpush.msra.mxu3 %v1270_v42 }
 0x363   :  { %v1031_v6 = vpop.permute.xlu1 %1030  ;;  %1052 = vrot.lane.b32.xlu1 %v1006_v37, %s2038_s9 }
 0x364   :  { %v1075_v41 = vadd.f32 %v1031_v6, %v915_v36  ;;  %v1269_v36 = vld [vmem:[%s3502_s6 + $0x28] sm:$0xff]  ;;  %v3003_v6 = vld [vmem:[%s3496_s0 + $0x38] sm:$0xff] }
 0x365   :  { %1338 = vmatpush.msra.mxu2 %v1269_v36  ;;  %1856 = vmatpush.msra.mxu3 %v1269_v36  ;;  %v3082_v36 = vld [vmem:[%s3496_s0 + $0x70] sm:$0xff] }
 0x366   :  { %v1091_v47 = vmul.f32 %v2917_v43, %v1075_v41  ;;  %1126 = vrot.lane.b32.xlu2 %v1075_v41, %s2037_s15  ;;  %v881_v58 = vpop.permute.xlu2 %880 }
 0x367   :  { %v920_v35 = vadd.f32 %v881_v58, %v760_v12  ;;  %1339 = vmatpush.msra.mxu2 %v1268_v23  ;;  %1857 = vmatpush.msra.mxu3 %v1268_v23 }
 0x368   :  { %1190 = vrot.lane.b32.xlu0 %v1091_v47, %s2038_s9  ;;  %v1267_v47 = vld [vmem:[%s3502_s6 + $0x18] sm:$0xff] }
 0x369   :  { %1340 = vmatpush.msra.mxu2 %v1267_v47  ;;  %1858 = vmatpush.msra.mxu3 %v1267_v47 }
 0x36b   :  { %v875_v39 = vpop.permute.xlu1 %874  ;;  %894 = vrot.lane.b32.xlu1 %v847_v11, %s2042_s16  ;;  %v761_v11 = vmul.f32 %v2827_v31, %v2836_v59  ;;  %1341 = vmatpush.msra.mxu2 %v1266_v30  ;;  %v3040_v59 = vld [vmem:[%s3496_s0 + $0x48] sm:$0xff]  ;;  %s1769_s16 = sshll.u32 %s3504_s8, 4  ;;  %s1770_s16 = int_to_ptr.hbm [resolvable:$true] %s1769_s16 }
 0x36c   :  { %v917_v29 = vadd.f32 %v875_v39, %v757_v10  ;;  %v1265_v39 = vld [vmem:[%s3502_s6 + $0x8] sm:$0xff]  ;;  %1859 = vmatpush.msra.mxu3 %v1266_v30  ;;  %v767_v30 = vmul.f32 %v2925_v38, %v2784_v53 }
 0x36d   :  { %1342 = vmatpush.msra.mxu2 %v1265_v39 }
 0x36e   :  { %1128 = vrot.lane.b32.xlu2 %v1076_v34, %s2037_s15  ;;  %v1077_v50 = vadd.f32 %v1035_v62, %v917_v29  ;;  %v883_v44 = vpop.permute.xlu2 %882  ;;  %1860 = vmatpush.msra.mxu3 %v1265_v39 }
 0x36f   :  { %v921_v10 = vadd.f32 %v883_v44, %v761_v11 }
 0x370   :  { %1192 = vrot.lane.b32.xlu0 %v1092_v52, %s2038_s9  ;;  %v1093_v19 = vmul.f32 %v2952_v20, %v1077_v50  ;;  %v1264_v52 = vld [vmem:[%s3502_s6] sm:$0xff] }
 0x371   :  { %1343 = vmatpush.msra.mxu2 %v1264_v52  ;;  %1861 = vmatpush.msra.mxu3 %v1264_v52 }
 0x373   :  { %1054 = vrot.lane.b32.xlu1 %v1007_v48, %s2038_s9  ;;  %v877_v28 = vpop.permute.xlu1 %876  ;;  %v762_v48 = vmul.f32 %v2846_v57, %v2839_v24 }
 0x374   :  { %v918_v56 = vadd.f32 %v877_v28, %v758_v32 }
 0x376   :  { %1130 = vrot.lane.b32.xlu2 %v1077_v50, %s2037_s15  ;;  %v3050_v50 = vld [vmem:[%s3496_s0 + $0x68] sm:$0xff] }
 0x377   :  { %v1101_v51 = vmul.f32 %v3050_v50, %v1085_v4 }
 0x378   :  { %1194 = vrot.lane.b32.xlu0 %v1093_v19, %s2038_s9 }
 0x37b   :  { %1208 = vrot.lane.b32.xlu1 %v1100_v60, %s2038_s9  ;;  %v3057_v60 = vld [vmem:[%s3496_s0 + $0x50] sm:$0xff] }
 0x37f   :  { %v1037_v54 = vpop.permute.xlu0 %1036 }
 0x380   :  { %v1078_v26 = vadd.f32 %v1037_v54, %v918_v56 }
 0x382   :  { %v1094_v15 = vmul.f32 %v2972_v21, %v1078_v26  ;;  %1132 = vrot.lane.b32.xlu2 %v1078_v26, %s2037_s15  ;;  %v885_v13 = vpop.permute.xlu2 %884 }
 0x383   :  { %v922_v62 = vadd.f32 %v885_v13, %v762_v48 }
 0x384   :  { %1196 = vrot.lane.b32.xlu0 %v1094_v15, %s2038_s9 }
 0x387   :  { %v1041_v25 = vpop.permute.xlu0 %1040 }
 0x388   :  { %v1080_v33 = vadd.f32 %v1041_v25, %v920_v35  ;;  %v879_v1 = vpop.permute.xlu1 %878 }
 0x389   :  { %v919_v37 = vadd.f32 %v879_v1, %v759_v3 }
 0x38a   :  { %1136 = vrot.lane.b32.xlu1 %v1080_v33, %s2037_s15  ;;  %v1096_v22 = vmul.f32 %v3023_v61, %v1080_v33  ;;  %v887_v12 = vpop.permute.xlu2 %886 }
 0x38b   :  { %v1079_v17 = vadd.f32 %v1039_v8, %v919_v37  ;;  %v923_v25 = vadd.f32 %v887_v12, %v763_v45 }
 0x38d   :  { %v1095_v41 = vmul.f32 %v3003_v6, %v1079_v17  ;;  %1134 = vrot.lane.b32.xlu2 %v1079_v17, %s2037_s15 }
 0x38f   :  { %1198 = vrot.lane.b32.xlu0 %v1095_v41, %s2038_s9  ;;  %v1043_v34 = vpop.permute.xlu0 %1042 }
 0x390   :  { %v1081_v31 = vadd.f32 %v1043_v34, %v921_v10 }
 0x392   :  { %1146 = vrot.lane.b32.xlu1 %v1085_v4, %s2037_s15  ;;  %v1097_v29 = vmul.f32 %v3040_v59, %v1081_v31  ;;  %v3094_v4 = vld [vmem:[%s3496_s0 + $0x58] sm:$0xff] }
 0x395   :  { %1200 = vrot.lane.b32.xlu2 %v1096_v22, %s2038_s9 }
 0x397   :  { %1144 = vrot.lane.b32.xlu0 %v2946_v46, %s2037_s15 }
 0x39d   :  { %1138 = vrot.lane.b32.xlu2 %v1081_v31, %s2037_s15  ;;  %v3107_v31 = vld [vmem:[%s3496_s0 + $0x78] sm:$0xff] }
 0x39f   :  { %1202 = vrot.lane.b32.xlu0 %v1097_v29, %s2038_s9 }
 0x3a3   :  { %v1045_v46 = vpop.permute.xlu0 %1044 }
 0x3a4   :  { %v1082_v19 = vadd.f32 %v1045_v46, %v922_v62 }
 0x3a5   :  { %1210 = vrot.lane.b32.xlu2 %v1101_v51, %s2038_s9 }
 0x3a6   :  { %v1098_v8 = vmul.f32 %v3057_v60, %v1082_v19 }
 0x3a7   :  { %1140 = vrot.lane.b32.xlu0 %v1082_v19, %s2037_s15 }
 0x3a8   :  { %1204 = vrot.lane.b32.xlu1 %v1098_v8, %s2038_s9  ;;  %v1427_v8 = vsub.f32 0.0, %v2890_v49 }
 0x3b5   :  { %v1121_v24 = vpop.permute.xlu1 %1120 }
 0x3b6   :  { %v1232_v57 = vsel %vm320_vm1, %v2869_v0, %v1121_v24  ;;  %v1425_v24 = vsub.f32 0.0, %v2869_v0 }
 0x3b7   :  { %v1185_v28 = vpop.permute.xlu0 %1184 }
 0x3b8   :  { %v1248_v32 = vsel %vm337_vm2, %v1232_v57, %v1185_v28  ;;  %v1426_v28 = vsub.f32 0.0, %v2881_v63 }
 0x3b9   :  { %1810 = vmatmul.msk.f32.vlgmr.msra.gmra.mxu2 %vm78_vm0, %v1248_v32 }
 0x3bd   :  { %v1123_v56 = vpop.permute.xlu1 %1122 }
 0x3be   :  { %v1233_v54 = vsel %vm320_vm1, %v2881_v63, %v1123_v56  ;;  %v1430_v56 = vsub.f32 0.0, %v2952_v20 }
 0x3bf   :  { %v1187_v16 = vpop.permute.xlu0 %1186 }
 0x3c0   :  { %v1249_v26 = vsel %vm337_vm2, %v1233_v54, %v1187_v16  ;;  %v1127_v33 = vpop.permute.xlu2 %1126  ;;  %v1428_v54 = vsub.f32 0.0, %v2917_v43 }
 0x3c1   :  { %1811 = vmatmul.msk.f32.gmra.mxu2 %vm78_vm0, %v1249_v26  ;;  %v1235_v40 = vsel %vm320_vm1, %v2917_v43, %v1127_v33 }
 0x3c5   :  { %v1189_v15 = vpop.permute.xlu1 %1188 }
 0x3c7   :  { %v1125_v58 = vpop.permute.xlu0 %1124 }
 0x3c8   :  { %v1234_v7 = vsel %vm320_vm1, %v2890_v49, %v1125_v58  ;;  %v1129_v41 = vpop.permute.xlu2 %1128 }
 0x3c9   :  { %v1250_v35 = vsel %vm337_vm2, %v1234_v7, %v1189_v15  ;;  %v1236_v22 = vsel %vm320_vm1, %v2935_v55, %v1129_v41  ;;  %v1434_v41 = vsub.f32 0.0, %v3040_v59 }
 0x3ca   :  { %1812 = vmatmul.msk.f32.gmra.mxu2 %vm78_vm0, %v1250_v35  ;;  %v1433_v35 = vsub.f32 0.0, %v3023_v61 }
 0x3cd   :  { %v893_v3 = vpop.permute.xlu1 %892 }
 0x3ce   :  { %v926_v37 = vadd.f32 %v893_v3, %v766_v18  ;;  %v1431_v3 = vsub.f32 0.0, %v2972_v21 }
 0x3cf   :  { %v1047_v9 = vpop.permute.xlu0 %1046 }
 0x3d0   :  { %v1083_v1 = vadd.f32 %v1047_v9, %v923_v25  ;;  %v1131_v34 = vpop.permute.xlu2 %1130 }
 0x3d1   :  { %v1237_v53 = vsel %vm320_vm1, %v2952_v20, %v1131_v34  ;;  %v1432_v34 = vsub.f32 0.0, %v3003_v6 }
 0x3d2   :  { %1142 = vrot.lane.b32.xlu1 %v1083_v1, %s2037_s15  ;;  %v1099_v47 = vmul.f32 %v3094_v4, %v1083_v1 }
 0x3d5   :  { %v1053_v42 = vpop.permute.xlu1 %1052 }
 0x3d6   :  { %v1086_v17 = vadd.f32 %v1053_v42, %v926_v37 }
 0x3d8   :  { %v1102_v5 = vmul.f32 %v3082_v36, %v1086_v17  ;;  %1148 = vrot.lane.b32.xlu2 %v1086_v17, %s2037_s15 }
 0x3da   :  { %1212 = vrot.lane.b32.xlu0 %v1102_v5, %s2038_s9  ;;  %v1191_v27 = vpop.permute.xlu0 %1190 }
 0x3db   :  { %v1251_v2 = vsel %vm337_vm2, %v1235_v40, %v1191_v27  ;;  %v1436_v40 = vsub.f32 0.0, %v3094_v4 }
 0x3dc   :  { %1813 = vmatmul.msk.f32.gmra.mxu2 %vm78_vm0, %v1251_v2  ;;  %v1133_v48 = vpop.permute.xlu2 %1132  ;;  %v1429_v2 = vsub.f32 0.0, %v2935_v55 }
 0x3dd   :  { %v895_v23 = vpop.permute.xlu1 %894  ;;  %v1238_v51 = vsel %vm320_vm1, %v2972_v21, %v1133_v48 }
 0x3de   :  { %v927_v39 = vadd.f32 %v895_v23, %v767_v30 }
 0x3e0   :  { %1206 = vrot.lane.b32.xlu2 %v1099_v47, %s2038_s9 }
 0x3e2   :  { %v1193_v44 = vpop.permute.xlu0 %1192 }
 0x3e3   :  { %v1252_v11 = vsel %vm337_vm2, %v1236_v22, %v1193_v44  ;;  %v1439_v22 = vsub.f32 0.0, %v3082_v36  ;;  %v1437_v44 = vsub.f32 0.0, %v2959_v14 }
 0x3e4   :  { %1814 = vmatmul.msk.f32.gmra.mxu2 %vm78_vm0, %v1252_v11 }
 0x3e5   :  { %v1055_v10 = vpop.permute.xlu1 %1054 }
 0x3e6   :  { %v1087_v52 = vadd.f32 %v1055_v10, %v927_v39  ;;  %v1440_v39 = vsub.f32 0.0, %v3107_v31  ;;  %v1435_v10 = vsub.f32 0.0, %v3057_v60 }
 0x3e7   :  { %v1135_v62 = vpop.permute.xlu2 %1134 }
 0x3e8   :  { %v1103_v29 = vmul.f32 %v3107_v31, %v1087_v52  ;;  %1150 = vrot.lane.b32.xlu0 %v1087_v52, %s2037_s15  ;;  %1525 = vrot.lane.b32.xlu2 %v1427_v8, %s2038_s9  ;;  %v1239_v16 = vsel %vm320_vm1, %v3003_v6, %v1135_v62  ;;  %v1438_v52 = vsub.f32 0.0, %v3050_v50 }
 0x3ea   :  { %1214 = vrot.lane.b32.xlu1 %v1103_v29, %s2038_s9  ;;  %v1195_v38 = vpop.permute.xlu0 %1194  ;;  %v3179_v29 = vld [vmem:[%s3503_s7] ss:$0 sm:$0xff] }
 0x3eb   :  { %v1253_v13 = vsel %vm337_vm2, %v1237_v53, %v1195_v38 }
 0x3ec   :  { %1815 = vmatmul.msk.f32.gmra.mxu2 %vm78_vm0, %v1253_v13 }
 0x3ed   :  { %v1209_v57 = vpop.permute.xlu1 %1208 }
 0x3ef   :  { %v1201_v32 = vpop.permute.xlu2 %1200 }
 0x3f0   :  { %1521 = vrot.lane.b32.xlu0 %v1425_v24, %s2038_s9  ;;  %1531 = vrot.lane.b32.xlu2 %v1430_v56, %s2038_s9 }
 0x3f2   :  { %1523 = vrot.lane.b32.xlu1 %v1426_v28, %s2038_s9 }
 0x3f6   :  { %v1197_v46 = vpop.permute.xlu0 %1196 }
 0x3f7   :  { %v1254_v19 = vsel %vm337_vm2, %v1238_v51, %v1197_v46  ;;  %v1139_v7 = vpop.permute.xlu2 %1138 }
 0x3f8   :  { %1816 = vmatmul.msk.f32.gmra.mxu2 %vm78_vm0, %v1254_v19  ;;  %1527 = vrot.lane.b32.xlu0 %v1428_v54, %s2038_s9  ;;  %v1241_v37 = vsel %vm320_vm1, %v3040_v59, %v1139_v7 }
 0x3f9   :  { %1537 = vrot.lane.b32.xlu2 %v1433_v35, %s2038_s9 }
 0x3fa   :  { %1529 = vrot.lane.b32.xlu1 %v1429_v2, %s2038_s9 }
 0x3fc   :  { %v1137_v58 = vpop.permute.xlu1 %1136 }
 0x3fd   :  { %v1240_v12 = vsel %vm320_vm1, %v3023_v61, %v1137_v58 }
 0x3fe   :  { %v1256_v9 = vsel %vm337_vm2, %v1240_v12, %v1201_v32 }
 0x3ff   :  { %v1211_v17 = vpop.permute.xlu2 %1210 }
 0x400   :  { %1533 = vrot.lane.b32.xlu0 %v1431_v3, %s2038_s9 }
 0x401   :  { %v1199_v26 = vpop.permute.xlu0 %1198  ;;  %1543 = vrot.lane.b32.xlu2 %v1436_v40, %s2038_s9 }
 0x402   :  { %v1255_v15 = vsel %vm337_vm2, %v1239_v16, %v1199_v26  ;;  %1535 = vrot.lane.b32.xlu1 %v1432_v34, %s2038_s9 }
 0x403   :  { %1817 = vmatmul.msk.f32.gmra.mxu2 %vm78_vm0, %v1255_v15 }
 0x404   :  { %v1147_v1 = vpop.permute.xlu1 %1146 }
 0x405   :  { %v1245_v18 = vsel %vm320_vm1, %v3050_v50, %v1147_v1 }
 0x406   :  { %v1261_v27 = vsel %vm337_vm2, %v1245_v18, %v1211_v17 }
 0x408   :  { %1539 = vrot.lane.b32.xlu0 %v1434_v41, %s2038_s9 }
 0x409   :  { %v1145_v45 = vpop.permute.xlu0 %1144  ;;  %1549 = vrot.lane.b32.xlu2 %v1439_v22, %s2038_s9 }
 0x40a   :  { %v1244_v25 = vsel %vm320_vm1, %v2959_v14, %v1145_v45  ;;  %1541 = vrot.lane.b32.xlu1 %v1435_v10, %s2038_s9 }
 0x40b   :  { %v1260_v33 = vsel %vm337_vm2, %v1244_v25, %v1209_v57  ;;  %1818 = vmatmul.msk.f32.gmra.mxu2 %vm78_vm0, %v1256_v9 }
 0x40c   :  { %1822 = vmatmul.msk.f32.vlgmr.msra.gmra.mxu3 %vm78_vm0, %v1260_v33 }
 0x410   :  { %1545 = vrot.lane.b32.xlu0 %v1437_v44, %s2038_s9 }
 0x411   :  { %v1203_v42 = vpop.permute.xlu0 %1202 }
 0x412   :  { %v1257_v5 = vsel %vm337_vm2, %v1241_v37, %v1203_v42  ;;  %1547 = vrot.lane.b32.xlu1 %v1438_v52, %s2038_s9 }
 0x413   :  { %1819 = vmatmul.msk.f32.gmra.mxu2 %vm78_vm0, %v1257_v5 }
 0x414   :  { %1823 = vmatmul.msk.f32.gmra.mxu3 %vm78_vm0, %v1261_v27 }
 0x418   :  { %1551 = vrot.lane.b32.xlu0 %v1440_v39, %s2038_s9 }
 0x419   :  { %v1141_v23 = vpop.permute.xlu0 %1140 }
 0x41a   :  { %v1242_v47 = vsel %vm320_vm1, %v3057_v60, %v1141_v23  ;;  %v1205_v30 = vpop.permute.xlu1 %1204 }
 0x41b   :  { %v1258_v11 = vsel %vm337_vm2, %v1242_v47, %v1205_v30 }
 0x41c   :  { %1820 = vmatmul.msk.f32.gmra.mxu2 %vm78_vm0, %v1258_v11 }
 0x432   :  { %v1149_v53 = vpop.permute.xlu2 %1148 }
 0x433   :  { %v1246_v56 = vsel %vm320_vm1, %v3082_v36, %v1149_v53 }
 0x43a   :  { %v1207_v19 = vpop.permute.xlu2 %1206 }
 0x43c   :  { %v1345_v38 = vpop.f32.mrf.mxu2 }
 0x43d   :  { %v3182_v13 = vadd.f32 %v3179_v29, %v1345_v38 }
 0x43f   :  { %v1393_v48 = vmax.f32 %v3182_v13, 0.0 }
 0x441   :  { %v1409_v62 = vsub.f32 0.0, %v1393_v48 }
 0x443   :  { %1457 = vrot.lane.b32.xlu2 %v1409_v62, %s2038_s9 }
 0x444   :  { %v1348_v51 = vpop.f32.mrf.mxu2  ;;  %v1143_v46 = vpop.permute.xlu1 %1142 }
 0x445   :  { %v3189_v8 = vadd.f32 %v3179_v29, %v1348_v51  ;;  %v1243_v24 = vsel %vm320_vm1, %v3094_v4, %v1143_v46 }
 0x446   :  { %v1259_v57 = vsel %vm337_vm2, %v1243_v24, %v1207_v19 }
 0x447   :  { %v1394_v28 = vmax.f32 %v3189_v8, 0.0  ;;  %1821 = vmatmul.msk.f32.gmra.mxu2 %vm78_vm0, %v1259_v57 }
 0x449   :  { %v1410_v32 = vsub.f32 0.0, %v1394_v28 }
 0x44b   :  { %1459 = vrot.lane.b32.xlu0 %v1410_v32, %s2038_s9 }
 0x44c   :  { %v1213_v54 = vpop.permute.xlu0 %1212 }
 0x44d   :  { %v1351_v16 = vpop.f32.mrf.mxu2  ;;  %v1262_v26 = vsel %vm337_vm2, %v1246_v56, %v1213_v54 }
 0x44e   :  { %v3201_v15 = vadd.f32 %v3179_v29, %v1351_v16  ;;  %1824 = vmatmul.msk.f32.gmra.mxu3 %vm78_vm0, %v1262_v26 }
 0x450   :  { %v1395_v58 = vmax.f32 %v3201_v15, 0.0 }
 0x452   :  { %v1411_v12 = vsub.f32 0.0, %v1395_v58 }
 0x454   :  { %1461 = vrot.lane.b32.xlu1 %v1411_v12, %s2038_s9  ;;  %v1570_v12 = vsel %vm320_vm1, %v1394_v28, %v2881_v63  ;;  %v1571_v28 = vsel %vm320_vm1, %v1395_v58, %v2890_v49 }
 0x45a   :  { %v1151_v7 = vpop.permute.xlu0 %1150 }
 0x45b   :  { %v1247_v35 = vsel %vm320_vm1, %v3107_v31, %v1151_v7 }
 0x45c   :  { %v1215_v45 = vpop.permute.xlu1 %1214 }
 0x45d   :  { %v1263_v3 = vsel %vm337_vm2, %v1247_v35, %v1215_v45 }
 0x45e   :  { %1825 = vmatmul.msk.f32.gmra.mxu3 %vm78_vm0, %v1263_v3 }
 0x45f   :  { %v1354_v25 = vpop.f32.mrf.mxu2 }
 0x460   :  { %v3223_v41 = vadd.f32 %v3179_v29, %v1354_v25 }
 0x462   :  { %v3212_v1 = vpop.permute.xlu0 %1521  ;;  %v1396_v30 = vmax.f32 %v3223_v41, 0.0 }
 0x464   :  { %v1412_v11 = vsub.f32 0.0, %v1396_v30  ;;  %v1524_v38 = vpop.permute.xlu1 %1523 }
 0x467   :  { %v1357_v9 = vpop.f32.mrf.mxu2 }
 0x468   :  { %v3238_v34 = vadd.f32 %v3179_v29, %v1357_v9 }
 0x46a   :  { %v3216_v42 = vpop.permute.xlu0 %1527  ;;  %v1397_v53 = vmax.f32 %v3238_v34, 0.0 }
 0x46c   :  { %v1413_v62 = vsub.f32 0.0, %v1397_v53  ;;  %v3261_v32 = vpop.permute.xlu1 %1529 }
 0x46f   :  { %v1360_v33 = vpop.f32.mrf.mxu2 }
 0x472   :  { %v3227_v23 = vpop.permute.xlu0 %1533 }
 0x474   :  { %v3270_v26 = vpop.permute.xlu1 %1535 }
 0x47a   :  { %v3244_v52 = vpop.permute.xlu0 %1539 }
 0x47b   :  { %v3214_v18 = vpop.f32.mrf.mxu2 }
 0x47c   :  { %v3276_v3 = vpop.permute.xlu1 %1541 }
 0x482   :  { %v3254_v8 = vpop.permute.xlu0 %1545 }
 0x484   :  { %v3278_v25 = vpop.permute.xlu1 %1547 }
 0x486   :  { %v1366_v37 = vpop.f32.mrf.mxu2 }
 0x487   :  { %v3250_v51 = vadd.f32 %v3179_v29, %v1366_v37 }
 0x489   :  { %v1400_v46 = vmax.f32 %v3250_v51, 0.0 }
 0x48a   :  { %v3265_v54 = vpop.permute.xlu0 %1551 }
 0x48b   :  { %v1416_v24 = vsub.f32 0.0, %v1400_v46 }
 0x48e   :  { %v1369_v2 = vpop.f32.mrf.mxu2 }
 0x48f   :  { %v1381_v17 = vpop.f32.mrf.mxu3  ;;  %v3303_v15 = vadd.f32 %v3179_v29, %v1369_v2 }
 0x490   :  { %v3219_v5 = vadd.f32 %v3179_v29, %v1381_v17 }
 0x492   :  { %v1405_v40 = vmax.f32 %v3219_v5, 0.0 }
 0x494   :  { %v1421_v27 = vsub.f32 0.0, %v1405_v40 }
 0x496   :  { %1481 = vrot.lane.b32.xlu2 %v1421_v27, %s2038_s9  ;;  %v1372_v10 = vpop.f32.mrf.mxu2 }
 0x497   :  { %v1384_v47 = vpop.f32.mrf.mxu3 }
 0x498   :  { %v3232_v22 = vadd.f32 %v3179_v29, %v1384_v47  ;;  %v3285_v47 = vadd.f32 %v3179_v29, %v1360_v33  ;;  %v1619_v33 = vld [vmem:[%s3498_s2 + $0x10] sm:$0xff] }
 0x49a   :  { %v1406_v44 = vmax.f32 %v3232_v22, 0.0 }
 0x49c   :  { %v1422_v39 = vsub.f32 0.0, %v1406_v44 }
 0x49e   :  { %1463 = vrot.lane.b32.xlu2 %v1412_v11, %s2038_s9  ;;  %1483 = vrot.lane.b32.xlu0 %v1422_v39, %s2038_s9  ;;  %v1398_v39 = vmax.f32 %v3285_v47, 0.0 }
 0x49f   :  { %v1375_v19 = vpop.f32.mrf.mxu2 }
 0x4a0   :  { %v3259_v57 = vadd.f32 %v3179_v29, %v1375_v19  ;;  %v1414_v19 = vsub.f32 0.0, %v1398_v39 }
 0x4a2   :  { %v1403_v56 = vmax.f32 %v3259_v57, 0.0 }
 0x4a4   :  { %v1419_v16 = vsub.f32 0.0, %v1403_v56  ;;  %v1579_v51 = vsel %vm320_vm1, %v1403_v56, %v3057_v60  ;;  %v1630_v56 = vld [vmem:[%s3498_s2 + $0x68] sm:$0xff] }
 0x4a6   :  { %1465 = vrot.lane.b32.xlu0 %v1413_v62, %s2038_s9 }
 0x4ae   :  { %1471 = vrot.lane.b32.xlu0 %v1416_v24, %s2038_s9  ;;  %v3507_v24 = vmax.f32 %v3303_v15, 0.0 }
 0x4b0   :  { %v1417_v2 = vsub.f32 0.0, %v3507_v24 }
 0x4b6   :  { %1477 = vrot.lane.b32.xlu0 %v1419_v16, %s2038_s9 }
 0x4bd   :  { %v1460_v7 = vpop.permute.xlu0 %1459 }
 0x4be   :  { %v1586_v35 = vsel %vm337_vm2, %v1570_v12, %v1460_v7 }
 0x4bf   :  { %v1602_v45 = vsel %vm78_vm0, %v1586_v35, %v1524_v38  ;;  %v1526_v38 = vpop.permute.xlu2 %1525 }
 0x4c6   :  { %v1462_v27 = vpop.permute.xlu1 %1461 }
 0x4c7   :  { %v1587_v11 = vsel %vm337_vm2, %v1571_v28, %v1462_v27  ;;  %v3311_v35 = vpop.permute.xlu2 %1531 }
 0x4c8   :  { %v1603_v62 = vsel %vm78_vm0, %v1587_v11, %v1526_v38  ;;  %v3331_v38 = vadd.f32 %v3179_v29, %v1372_v10 }
 0x4c9   :  { %v1635_v49 = vmul.f32 %v1619_v33, %v1603_v62 }
 0x4ca   :  { %v1378_v12 = vpop.f32.mrf.mxu2 }
 0x4cb   :  { %v3320_v27 = vadd.f32 %v3179_v29, %v1378_v12 }
 0x4cd   :  { %v3506_v11 = vmax.f32 %v3320_v27, 0.0 }
 0x4cf   :  { %v1420_v62 = vsub.f32 0.0, %v3506_v11  ;;  %v3335_v33 = vpop.permute.xlu2 %1537  ;;  %v1581_v11 = vsel %vm320_vm1, %v1405_v40, %v2959_v14  ;;  %v1573_v14 = vsel %vm320_vm1, %v1397_v53, %v2935_v55  ;;  %v1572_v40 = vsel %vm320_vm1, %v1396_v30, %v2917_v43  ;;  %v1621_v55 = vld [vmem:[%s3498_s2 + $0x20] sm:$0xff]  ;;  %v1620_v43 = vld [vmem:[%s3498_s2 + $0x18] sm:$0xff] }
 0x4d0   :  { %v1576_v30 = vsel %vm320_vm1, %v1400_v46, %v3003_v6 }
 0x4d1   :  { %v1387_v9 = vpop.f32.mrf.mxu3 }
 0x4d2   :  { %v3281_v37 = vadd.f32 %v3179_v29, %v1387_v9  ;;  %v3315_v9 = vadd.f32 %v3179_v29, %v3214_v18 }
 0x4d4   :  { %v3505_v17 = vmax.f32 %v3281_v37, 0.0  ;;  %v1399_v28 = vmax.f32 %v3315_v9, 0.0 }
 0x4d6   :  { %v1423_v63 = vsub.f32 0.0, %v3505_v17  ;;  %v1415_v18 = vsub.f32 0.0, %v1399_v28  ;;  %v1575_v22 = vsel %vm320_vm1, %v1399_v28, %v2972_v21 }
 0x4d8   :  { %1485 = vrot.lane.b32.xlu1 %v1423_v63, %s2038_s9 }
 0x4e0   :  { %1467 = vrot.lane.b32.xlu1 %v1414_v19, %s2038_s9  ;;  %1653 = vadd.xlane.f32.xlu0 %v1635_v49  ;;  %v1402_v19 = vmax.f32 %v3331_v38, 0.0 }
 0x4e1   :  { %v1390_v58 = vpop.f32.mrf.mxu3 }
 0x4e2   :  { %v3308_v16 = vadd.f32 %v3179_v29, %v1390_v58  ;;  %v1418_v49 = vsub.f32 0.0, %v1402_v19  ;;  %v3343_v58 = vpop.permute.xlu2 %1543  ;;  %v1578_v21 = vsel %vm320_vm1, %v1402_v19, %v3040_v59 }
 0x4e4   :  { %v1408_v7 = vmax.f32 %v3308_v16, 0.0 }
 0x4e6   :  { %v1424_v63 = vsub.f32 0.0, %v1408_v7  ;;  %v1584_v19 = vsel %vm320_vm1, %v1408_v7, %v3107_v31  ;;  %v1632_v31 = vld [vmem:[%s3498_s2 + $0x78] sm:$0xff] }
 0x4e8   :  { %1473 = vrot.lane.b32.xlu1 %v1417_v2, %s2038_s9  ;;  %1487 = vrot.lane.b32.xlu2 %v1424_v63, %s2038_s9  ;;  %v1569_v2 = vsel %vm320_vm1, %v1393_v48, %v2869_v0  ;;  %v1618_v0 = vld [vmem:[%s3498_s2 + $0x8] sm:$0xff] }
 0x4ea   :  { %v3345_v29 = vpop.permute.xlu2 %1549 }
 0x4f0   :  { %1479 = vrot.lane.b32.xlu1 %v1420_v62, %s2038_s9  ;;  %1469 = vrot.lane.b32.xlu2 %v1415_v18, %s2038_s9 }
 0x4f2   :  { %v1458_v10 = vpop.permute.xlu2 %1457 }
 0x4f3   :  { %v1585_v63 = vsel %vm337_vm2, %v1569_v2, %v1458_v10  ;;  %v1634_v2 = vmul.f32 %v1618_v0, %v1602_v45 }
 0x4f4   :  { %v1601_v18 = vsel %vm78_vm0, %v1585_v63, %v3212_v1  ;;  %v1629_v1 = vld [vmem:[%s3498_s2 + $0x60] sm:$0xff] }
 0x4f8   :  { %1475 = vrot.lane.b32.xlu2 %v1418_v49, %s2038_s9  ;;  %v1617_v49 = vld [vmem:[%s3498_s2] sm:$0xff] }
 0x4f9   :  { %v1633_v17 = vmul.f32 %v1617_v49, %v1601_v18  ;;  %v1582_v49 = vsel %vm320_vm1, %v1406_v44, %v3050_v50  ;;  %v1623_v44 = vld [vmem:[%s3498_s2 + $0x30] sm:$0xff] }
 0x4fa   :  { %v1482_v62 = vpop.permute.xlu2 %1481 }
 0x4fb   :  { %v1597_v13 = vsel %vm337_vm2, %v1581_v11, %v1482_v62 }
 0x4fc   :  { %v1613_v48 = vsel %vm78_vm0, %v1597_v13, %v3254_v8 }
 0x4fd   :  { %v1645_v5 = vmul.f32 %v1629_v1, %v1613_v48  ;;  %v1574_v1 = vsel %vm320_vm1, %v1398_v39, %v2952_v20 }
 0x502   :  { %v1464_v10 = vpop.permute.xlu2 %1463 }
 0x503   :  { %v1588_v8 = vsel %vm337_vm2, %v1572_v40, %v1464_v10  ;;  %v1622_v10 = vld [vmem:[%s3498_s2 + $0x28] sm:$0xff] }
 0x504   :  { %v1604_v34 = vsel %vm78_vm0, %v1588_v8, %v3216_v42  ;;  %v1624_v42 = vld [vmem:[%s3498_s2 + $0x38] sm:$0xff] }
 0x505   :  { %v1636_v53 = vmul.f32 %v1620_v43, %v1604_v34  ;;  %v3510_v43 = vmax.f32 %v3281_v37, 0.0 }
 0x510   :  { %v1484_v12 = vpop.permute.xlu0 %1483 }
 0x511   :  { %v1598_v57 = vsel %vm337_vm2, %v1582_v49, %v1484_v12 }
 0x512   :  { %v1614_v60 = vsel %vm78_vm0, %v1598_v57, %v3278_v25 }
 0x518   :  { %v1466_v24 = vpop.permute.xlu0 %1465 }
 0x51a   :  { %1649 = vadd.xlane.f32.xlu1 %v1633_v17  ;;  %v1589_v17 = vsel %vm337_vm2, %v1573_v14, %v1466_v24 }
 0x51b   :  { %v1605_v45 = vsel %vm78_vm0, %v1589_v17, %v3261_v32  ;;  %v1625_v17 = vld [vmem:[%s3498_s2 + $0x40] sm:$0xff] }
 0x51c   :  { %v1637_v41 = vmul.f32 %v1621_v55, %v1605_v45 }
 0x520   :  { %v1472_v11 = vpop.permute.xlu0 %1471 }
 0x521   :  { %1651 = vadd.xlane.f32.xlu2 %v1634_v2  ;;  %v1592_v32 = vsel %vm337_vm2, %v1576_v30, %v1472_v11  ;;  %v1628_v11 = vld [vmem:[%s3498_s2 + $0x58] sm:$0xff]  ;;  %v1631_v30 = vld [vmem:[%s3498_s2 + $0x70] sm:$0xff] }
 0x522   :  { %1673 = vadd.xlane.f32.xlu1 %v1645_v5  ;;  %v1608_v24 = vsel %vm78_vm0, %v1592_v32, %v3270_v26  ;;  %v1627_v26 = vld [vmem:[%s3498_s2 + $0x50] sm:$0xff] }
 0x523   :  { %v1640_v18 = vmul.f32 %v1624_v42, %v1608_v24  ;;  %v1697_v42 = vlaneseq }
 0x525   :  { %v1698_v37 = vand.u32 127, %v1697_v42 }
 0x527   :  { %v1716_v57 = vadd.s32 4294967256, %v1698_v37 }
 0x528   :  { %v1478_v63 = vpop.permute.xlu0 %1477 }
 0x529   :  { %1657 = vadd.xlane.f32.xlu2 %v1637_v41  ;;  %v1595_v6 = vsel %vm337_vm2, %v1579_v51, %v1478_v63  ;;  %v1583_v41 = vsel %vm320_vm1, %v3510_v43, %v3082_v36  ;;  %v1700_v63 = vadd.s32 4294967288, %v1698_v37 }
 0x52a   :  { %1655 = vadd.xlane.f32.xlu1 %v1636_v53  ;;  %v1611_v46 = vsel %vm78_vm0, %v1595_v6, %v3276_v3  ;;  %v1646_v3 = vmul.f32 %v1630_v56, %v1614_v60  ;;  %v1712_v56 = vadd.s32 4294967264, %v1698_v37 }
 0x52b   :  { %v1643_v62 = vmul.f32 %v1627_v26, %v1611_v46  ;;  %v1708_v46 = vadd.s32 4294967272, %v1698_v37  ;;  %v1704_v26 = vadd.s32 4294967280, %v1698_v37 }
 0x531   :  { %1663 = vadd.xlane.f32.xlu2 %v1640_v18 }
 0x539   :  { %1669 = vadd.xlane.f32.xlu2 %v1643_v62 }
 0x541   :  { %1675 = vadd.xlane.f32.xlu2 %v1646_v3 }
 0x542   :  { %v1488_v13 = vpop.permute.xlu2 %1487 }
 0x543   :  { %v1600_v14 = vsel %vm337_vm2, %v1584_v19, %v1488_v13  ;;  %v1736_v19 = vadd.s32 4294967216, %v1698_v37 }
 0x544   :  { %v1616_v5 = vsel %vm78_vm0, %v1600_v14, %v3265_v54 }
 0x545   :  { %v1648_v8 = vmul.f32 %v1632_v31, %v1616_v5  ;;  %v1740_v5 = vadd.s32 4294967208, %v1698_v37 }
 0x54a   :  { %v1486_v0 = vpop.permute.xlu1 %1485  ;;  %v1470_v50 = vpop.permute.xlu2 %1469 }
 0x54b   :  { %v1591_v25 = vsel %vm337_vm2, %v1575_v22, %v1470_v50 }
 0x54c   :  { %v1607_v12 = vsel %vm78_vm0, %v1591_v25, %v3227_v23  ;;  %v1626_v23 = vld [vmem:[%s3498_s2 + $0x48] sm:$0xff]  ;;  %s2043_s2 = smov [#allocation2]  }
 0x54d   :  { %v1639_v48 = vmul.f32 %v1623_v44, %v1607_v12  ;;  %v1720_v12 = vadd.s32 4294967248, %v1698_v37  ;;  %s1767_s11 = sshll.u32 %s2043_s2, 4  ;;  %s1768_s11 = int_to_ptr.vmem [resolvable:$true] %s1767_s11 }
 0x54f   :  { %1661 = vadd.xlane.f32.xlu1 %v1639_v48 }
 0x552   :  { %v1468_v9 = vpop.permute.xlu1 %1467  ;;  %v1476_v28 = vpop.permute.xlu2 %1475 }
 0x553   :  { %v1590_v2 = vsel %vm337_vm2, %v1574_v1, %v1468_v9  ;;  %v1594_v47 = vsel %vm337_vm2, %v1578_v21, %v1476_v28  ;;  %v1654_v18 = vpop.xlane.xlu0 %1653  ;;  %v1728_v1 = vadd.s32 4294967232, %v1698_v37  ;;  %v1724_v9 = vadd.s32 4294967240, %v1698_v37 }
 0x554   :  { %v1606_v20 = vsel %vm78_vm0, %v1590_v2, %v3311_v35  ;;  %v1610_v39 = vsel %vm78_vm0, %v1594_v47, %v3244_v52  ;;  %v3508_v35 = vmax.f32 %v3303_v15, 0.0  ;;  %v1705_v60 = vperm.slane %v1654_v18, %v1704_v26 }
 0x555   :  { %v1638_v59 = vmul.f32 %v1622_v10, %v1606_v20  ;;  %v1642_v38 = vmul.f32 %v1626_v23, %v1610_v39  ;;  %v1732_v20 = vadd.s32 4294967224, %v1698_v37 }
 0x556   :  { %v1577_v40 = vsel %vm320_vm1, %v3508_v35, %v3023_v61  ;;  %v3509_v61 = vmax.f32 %v3320_v27, 0.0  ;;  %v1599_v27 = vsel %vm337_vm2, %v1583_v41, %v1486_v0 }
 0x557   :  { %1659 = vadd.xlane.f32.xlu0 %v1638_v59  ;;  %1667 = vadd.xlane.f32.xlu1 %v1642_v38 }
 0x558   :  { %v1580_v15 = vsel %vm320_vm1, %v3509_v61, %v3094_v4  ;;  %v1615_v4 = vsel %vm78_vm0, %v1599_v27, %v3345_v29  ;;  %vm1754_vm1 = vcmask 982912  }
 0x559   :  { %v1647_v53 = vmul.f32 %v1631_v30, %v1615_v4 }
 0x55a   :  { %v1474_v52 = vpop.permute.xlu1 %1473 }
 0x55b   :  { %v1593_v16 = vsel %vm337_vm2, %v1577_v40, %v1474_v52 }
 0x55c   :  { %v1609_v7 = vsel %vm78_vm0, %v1593_v16, %v3335_v33 }
 0x55d   :  { %v1641_v54 = vmul.f32 %v1625_v17, %v1609_v7  ;;  %v1744_v17 = vadd.s32 4294967200, %v1698_v37 }
 0x55f   :  { %1665 = vadd.xlane.f32.xlu0 %v1641_v54  ;;  %1679 = vadd.xlane.f32.xlu1 %v1648_v8  ;;  %v1748_v54 = vadd.s32 4294967192, %v1698_v37 }
 0x562   :  { %v1480_v45 = vpop.permute.xlu1 %1479 }
 0x563   :  { %v1596_v55 = vsel %vm337_vm2, %v1580_v15, %v1480_v45  ;;  %v1752_v45 = vadd.s32 4294967184, %v1698_v37  ;;  %vm1758_vm2 = vcmask 1048512  }
 0x564   :  { %v1612_v34 = vsel %vm78_vm0, %v1596_v55, %v3343_v58  ;;  %vm1750_vm0 = vcmask 917312  }
 0x565   :  { %v1644_v33 = vmul.f32 %v1628_v11, %v1612_v34  ;;  %v1756_v11 = vadd.s32 4294967176, %v1698_v37 }
 0x567   :  { %1671 = vadd.xlane.f32.xlu0 %v1644_v33 }
 0x56f   :  { %1677 = vadd.xlane.f32.xlu0 %v1647_v53 }
 0x58d   :  { %v1650_v32 = vpop.xlane.xlu1 %1649 }
 0x58e   :  { %v1699_v29 = vperm.slane %v1650_v32, %v1698_v37 }
 0x594   :  { %v1652_v58 = vpop.xlane.xlu2 %1651 }
 0x595   :  { %v3490_v24 = vpop.xlane.xlu1 %1673  ;;  %v1701_v6 = vperm.slane %v1652_v58, %v1700_v63 }
 0x596   :  { %v1745_v61 = vperm.slane %v3490_v24, %v1744_v17 }
 0x597   :  { %v1703_v62 = vsel %vm1702_vm4, %v1701_v6, %v1699_v29 }
 0x598   :  { %v1707_v13 = vsel %vm1706_vm5, %v1705_v60, %v1703_v62 }
 0x59c   :  { %v1658_v36 = vpop.xlane.xlu2 %1657 }
 0x59d   :  { %v1656_v51 = vpop.xlane.xlu1 %1655  ;;  %v1713_v25 = vperm.slane %v1658_v36, %v1712_v56 }
 0x59e   :  { %v1709_v49 = vperm.slane %v1656_v51, %v1708_v46 }
 0x5a0   :  { %v1711_v50 = vsel %vm1710_vm6, %v1709_v49, %v1707_v13 }
 0x5a1   :  { %v1715_v48 = vsel %vm1714_vm7, %v1713_v25, %v1711_v50 }
 0x5a4   :  { %v1664_v0 = vpop.xlane.xlu2 %1663 }
 0x5a5   :  { %v1725_v47 = vperm.slane %v1664_v0, %v1724_v9 }
 0x5ac   :  { %v1670_v39 = vpop.xlane.xlu2 %1669 }
 0x5ad   :  { %v1737_v31 = vperm.slane %v1670_v39, %v1736_v19 }
 0x5b4   :  { %v1676_v15 = vpop.xlane.xlu2 %1675 }
 0x5b5   :  { %v1749_v33 = vperm.slane %v1676_v15, %v1748_v54 }
 0x5c2   :  { %v1662_v22 = vpop.xlane.xlu1 %1661 }
 0x5c3   :  { %v1721_v28 = vperm.slane %v1662_v22, %v1720_v12 }
 0x5ca   :  { %v1660_v3 = vpop.xlane.xlu0 %1659  ;;  %v1668_v59 = vpop.xlane.xlu1 %1667 }
 0x5cb   :  { %v1717_v44 = vperm.slane %v1660_v3, %v1716_v57  ;;  %v1733_v35 = vperm.slane %v1668_v59, %v1732_v20 }
 0x5cd   :  { %v1719_v21 = vsel %vm1718_vm8, %v1717_v44, %v1715_v48 }
 0x5ce   :  { %v1723_v23 = vsel %vm1722_vm9, %v1721_v28, %v1719_v21 }
 0x5cf   :  { %v1727_v38 = vsel %vm1726_vm10, %v1725_v47, %v1723_v23 }
 0x5d2   :  { %v1666_v10 = vpop.xlane.xlu0 %1665  ;;  %v1680_v55 = vpop.xlane.xlu1 %1679 }
 0x5d3   :  { %v1729_v2 = vperm.slane %v1666_v10, %v1728_v1  ;;  %v1757_v27 = vperm.slane %v1680_v55, %v1756_v11 }
 0x5d5   :  { %v1731_v14 = vsel %vm1730_vm11, %v1729_v2, %v1727_v38 }
 0x5d6   :  { %v1735_v40 = vsel %vm1734_vm12, %v1733_v35, %v1731_v14 }
 0x5d7   :  { %v1739_v7 = vsel %vm1738_vm13, %v1737_v31, %v1735_v40 }
 0x5da   :  { %v1672_v52 = vpop.xlane.xlu0 %1671 }
 0x5db   :  { %v1741_v16 = vperm.slane %v1672_v52, %v1740_v5 }
 0x5dd   :  { %v1743_v8 = vsel %vm1742_vm14, %v1741_v16, %v1739_v7 }
 0x5de   :  { %v1747_v34 = vsel %vm1746_vm15, %v1745_v61, %v1743_v8 }
 0x5df   :  { %v1751_v4 = vsel %vm1750_vm0, %v1749_v33, %v1747_v34 }
 0x5e2   :  { %v1678_v43 = vpop.xlane.xlu0 %1677 }
 0x5e3   :  { %v1753_v41 = vperm.slane %v1678_v43, %v1752_v45 }
 0x5e5   :  { %v1755_v30 = vsel %vm1754_vm1, %v1753_v41, %v1751_v4 }
 0x5e6   :  { %v1759_v53 = vsel %vm1758_vm2, %v1757_v27, %v1755_v30 }
 0x5e7   :  { %1761 = vst [vmem:[#allocation2] sm:$0x1] %v1759_v53 }
 0x5e8   :  { %1772 = dma.vmem_to_hbm [thread:$0]  %s1768_s11, 16, %s1770_s16, [#allocation3]  }
 0x5e9   :  { %2035 = dma.done.wait [#allocation3], 16  }
 0x5ea   :  { %2036 = vsyncadd [#allocation3], 4294967280 }
 0x5eb   :  { %1777 = vsyncpa [#allocation3], 1 }

</bundles_post_ra>
